<compile_context>
chip_gen: v7x
topology: tpu7x:2x2x1
jax: 0.10.0
libtpu: 0.0.40
codegen_flags: <defaults>
</compile_context>

<pallas_src>
import functools

import jax
import jax.numpy as jnp
from jax import lax
from jax.experimental import pallas as pl
from jax.experimental.pallas import tpu as pltpu

EPS = 1e-8


# ----------------------------------------------------------------------------
# Fused forward kernel: encoder -> Memory.read -> decoder (channel-blocked)
# ----------------------------------------------------------------------------

def _fused_forward_kernel(xs_ref, ew_ref, eb_ref, dw_ref, db_ref,
                          mem_ref, mn_ref,
                          keys_ref, states_ref, outp_ref):
    """xs_ref:    (Cin, Bp, hw)  VMEM -- split input patches, pixels on lanes.
       ew_ref:    (C, Cin) SMEM, eb_ref: (C,)  SMEM -- encoder 1x1 conv weights.
       dw_ref:    (Cin, C) SMEM, db_ref: (Cin,) SMEM -- decoder 1x1 conv weights.
       mem_ref:   (C, Nmem, hw) VMEM -- channel-blocked memory states.
       mn_ref:    (1, Nmem)     VMEM -- memory row norms ||m_n||.
       keys_ref / states_ref: (C, Bp, hw), outp_ref: (Cin, Bp, hw) outputs."""
    Cin, Bp, hw = xs_ref.shape
    C = ew_ref.shape[0]

    # ---- encoder: 1x1 conv + ReLU as unrolled VPU FMAs, channel-blocked ------
    x_ch = [xs_ref[ci] for ci in range(Cin)]            # Cin x (Bp, hw)
    keys = []
    for c in range(C):
        acc = ew_ref[c, 0] * x_ch[0]
        for ci in range(1, Cin):
            acc = acc + ew_ref[c, ci] * x_ch[ci]
        k_c = jnp.maximum(acc + eb_ref[c], 0.0)          # (Bp, hw)
        keys.append(k_c)
        keys_ref[c] = k_c

    # ---- Memory.read: cosine similarity -> softmax address -> weighted read --
    # dots and |k|^2 accumulated over channel blocks (K = hw per matmul);
    # memory norms folded into the (Bp, Nmem) similarity AFTER the matmul.
    mem_c = [mem_ref[c] for c in range(C)]               # C x (Nmem, hw)
    dots = lax.dot_general(keys[0], mem_c[0], (((1,), (1,)), ((), ())),
                           preferred_element_type=jnp.float32)   # (Bp, Nmem)
    ksq = jnp.sum(keys[0] * keys[0], axis=-1, keepdims=True)     # (Bp, 1)
    for c in range(1, C):
        dots = dots + lax.dot_general(keys[c], mem_c[c], (((1,), (1,)), ((), ())),
                                      preferred_element_type=jnp.float32)
        ksq = ksq + jnp.sum(keys[c] * keys[c], axis=-1, keepdims=True)
    kn = jnp.sqrt(ksq)                                    # (Bp, 1)
    denom = jnp.maximum(kn * mn_ref[...], EPS)            # (Bp, Nmem), product clamp
    sim = dots / denom

    sim = sim - jnp.max(sim, axis=-1, keepdims=True)
    e = jnp.exp(sim)
    addr = e / jnp.sum(e, axis=-1, keepdims=True)         # exact softmax (tiny tensor)

    # ---- weighted read + decoder 1x1 conv, channel-blocked --------------------
    states = []
    for c in range(C):
        st = jnp.dot(addr, mem_c[c], preferred_element_type=jnp.float32)  # (Bp, hw)
        states.append(st)
        states_ref[c] = st
    for co in range(Cin):
        acc = dw_ref[co, 0] * states[0]
        for c in range(1, C):
            acc = acc + dw_ref[co, c] * states[c]
        outp_ref[co] = acc + db_ref[co]


def fused_forward(xs, enc_w, enc_b, dec_w, dec_b, mem_blocked, mem_norm):
    """xs: (Cin, Bp, hw) split input; mem_blocked: (C, Nmem, hw);
    mem_norm: (1, Nmem).  Returns channel-blocked keys (C, Bp, hw),
    states (C, Bp, hw) and decoded patches (Cin, Bp, hw)."""
    Cin, Bp, hw = xs.shape
    C, Nmem, _ = mem_blocked.shape
    smem = pl.BlockSpec(memory_space=pltpu.MemorySpace.SMEM)
    return pl.pallas_call(
        _fused_forward_kernel,
        out_shape=(jax.ShapeDtypeStruct((C, Bp, hw), jnp.float32),
                   jax.ShapeDtypeStruct((C, Bp, hw), jnp.float32),
                   jax.ShapeDtypeStruct((Cin, Bp, hw), jnp.float32)),
        grid=(1,),
        in_specs=[
            pl.BlockSpec((Cin, Bp, hw), lambda i: (0, 0, 0)),     # split input (VMEM)
            smem, smem, smem, smem,                               # conv weights (SMEM)
            pl.BlockSpec((C, Nmem, hw), lambda i: (0, 0, 0)),     # memory (VMEM)
            pl.BlockSpec((1, Nmem), lambda i: (0, 0)),            # memory norms (VMEM)
        ],
        out_specs=(pl.BlockSpec((C, Bp, hw), lambda i: (0, 0, 0)),
                   pl.BlockSpec((C, Bp, hw), lambda i: (0, 0, 0)),
                   pl.BlockSpec((Cin, Bp, hw), lambda i: (0, 0, 0))),
        compiler_params=pltpu.CompilerParams(
            dimension_semantics=("arbitrary",),
            vmem_limit_bytes=8 * 1024 * 1024),   # ~0.1 MiB working set
    )(xs, enc_w, enc_b, dec_w, dec_b, mem_blocked, mem_norm)


# ----------------------------------------------------------------------------
# Split2d / Merge2d (pure index permutations of tiny tensors, fused by XLA/jit)
# ----------------------------------------------------------------------------

def split2d(x, h, w):
    # torch: cat(cat(x.split(h, dim=2), dim=0).split(w, dim=3), dim=0)
    B, C, H, W = x.shape
    nh, nw = H // h, W // w
    x = x.reshape(B, C, nh, h, W)
    x = jnp.transpose(x, (2, 0, 1, 3, 4)).reshape(nh * B, C, h, W)
    x = x.reshape(nh * B, C, h, nw, w)
    x = jnp.transpose(x, (3, 0, 1, 2, 4)).reshape(nw * nh * B, C, h, w)
    return x


def merge2d(x, output_size, kernel_size):
    # exact inverse of split2d
    H, W = output_size
    h, w = kernel_size
    n, C, _, _ = x.shape
    nh, nw = H // h, W // w
    B = n // (nh * nw)
    x = x.reshape(nw, nh * B, C, h, w)
    x = jnp.transpose(x, (1, 2, 3, 0, 4)).reshape(nh * B, C, h, W)
    x = x.reshape(nh, B, C, h, W)
    x = jnp.transpose(x, (1, 2, 0, 3, 4)).reshape(B, C, H, W)
    return x


def split_to_patches_chan_major(x, h, w):
    """(B, Cin, H, W) -> (Cin, Bp, h*w) with the torch Split2d patch ordering."""
    xp = split2d(x, h, w)                                   # (Bp, Cin, h, w)
    Bp, Cin = xp.shape[0], xp.shape[1]
    return jnp.transpose(xp, (1, 0, 2, 3)).reshape(Cin, Bp, h * w)


# ----------------------------------------------------------------------------
# Interestingness.forward (eval path: self.train == False)
# ----------------------------------------------------------------------------

def interestingness_forward(x, params, *, C, h, w):
    B, Cin, H, W = x.shape
    nh, nw = H // h, W // w
    Bp = B * nh * nw
    hw = h * w

    # coding = ae.encoder(x); coding = split2d(coding); states = memory.read(coding);
    # output = ae.decoder(merge2d(states))  -- all fused in one pallas_call.
    xs = split_to_patches_chan_major(x, h, w)               # (Cin, Bp, h*w)
    memory = params["memory"]                                # (Nmem, C*hw)
    Nmem = memory.shape[0]
    mem_blocked = jnp.transpose(memory.reshape(Nmem, C, hw), (1, 0, 2))  # (C, Nmem, hw)
    mem_norm = jnp.linalg.norm(memory, axis=-1)[None, :]                 # (1, Nmem)

    keys_cb, states_cb, out_cb = fused_forward(
        xs, params["enc_w"], params["enc_b"],
        params["dec_w"], params["dec_b"], mem_blocked, mem_norm)

    # TODO(synk): self.memory.write(coding) mutates the Memory parameter in place;
    # it does not affect this forward pass's returned (output, score), so the
    # stateful update is not materialized here.

    # Channel-blocked kernel outputs back to (Bp, C, h, w) patch layout
    # (tiny transposes, fused by XLA).
    keys_p = jnp.transpose(keys_cb, (1, 0, 2)).reshape(Bp, C, h, w)      # == coding
    states_p = jnp.transpose(states_cb, (1, 0, 2)).reshape(Bp, C, h, w)
    out_p = jnp.transpose(out_cb, (1, 0, 2)).reshape(Bp, Cin, h, w)

    output = merge2d(out_p, (H, W), (h, w))                 # (B, Cin, H, W)
    merged_states = merge2d(states_p, (H, W), (h, w))       # (B, C, H, W)

    # 1 - F.cosine_similarity(coding.view(C, -1), states.view(C, -1), -1).mean()
    # Computed in plain jnp: XLA fuses the merge2d transpose with this tiny
    # (C, B*H*W) reduction (no second pallas_call).
    a = keys_p.reshape(C, -1)
    b = merged_states.reshape(C, -1)
    num = jnp.sum(a * b, axis=-1)
    den = jnp.maximum(jnp.linalg.norm(a, axis=-1) * jnp.linalg.norm(b, axis=-1), EPS)
    score = 1.0 - jnp.mean(num / den)
    return output, score


# ----------------------------------------------------------------------------
# Pure-jnp reference mirroring the PyTorch module (for correctness check)
# ----------------------------------------------------------------------------

def reference_forward(x, params, *, C, h, w):
    B, Cin, H, W = x.shape
    ew, eb = params["enc_w"], params["enc_b"]
    dw, db = params["dec_w"], params["dec_b"]
    mem = params["memory"]

    cm = jnp.einsum("oc,bchw->bohw", ew, x) + eb[None, :, None, None]
    cm = jnp.maximum(cm, 0.0)                               # encoder + ReLU
    coding = split2d(cm, h, w)                              # (Bp, C, h, w)
    Bp = coding.shape[0]

    key = coding.reshape(Bp, -1)
    kn = jnp.linalg.norm(key, axis=-1, keepdims=True)
    mn = jnp.linalg.norm(mem, axis=-1, keepdims=True)
    sim = (key @ mem.T) / jnp.maximum(kn * mn.T, EPS)
    addr = jax.nn.softmax(sim, axis=-1)
    states = (addr @ mem).reshape(Bp, C, h, w)

    merged = merge2d(states, (H, W), (h, w))                # (B, C, H, W)
    out = jnp.einsum("oc,bchw->bohw", dw, merged) + db[None, :, None, None]

    a = coding.reshape(C, -1)
    b = merged.reshape(C, -1)
    num = jnp.sum(a * b, axis=-1)
    den = jnp.maximum(jnp.linalg.norm(a, axis=-1) * jnp.linalg.norm(b, axis=-1), EPS)
    return out, 1.0 - jnp.mean(num / den)


# ----------------------------------------------------------------------------

if __name__ == "__main__":
    # batch=2, input channels=4, spatial 16x16, latent channels=8,
    # split patches 8x8, memory with 16 slots of dim C*h*w = 512.
    B, Cin, H, W = 2, 4, 16, 16
    C, h, w = 8, 8, 8
    Nmem = 16

    rng = jax.random.PRNGKey(0)
    k1, k2, k3, k4, k5, kx = jax.random.split(rng, 6)
    params = {
        "enc_w": 0.1 * jax.random.normal(k1, (C, Cin), jnp.float32),
        "enc_b": 0.1 * jax.random.normal(k2, (C,), jnp.float32),
        "dec_w": 0.1 * jax.random.normal(k3, (Cin, C), jnp.float32),
        "dec_b": 0.1 * jax.random.normal(k4, (Cin,), jnp.float32),
        "memory": jax.random.normal(k5, (Nmem, C * h * w), jnp.float32),
    }
    x = jax.random.normal(kx, (B, Cin, H, W), jnp.float32)

    fwd = jax.jit(functools.partial(interestingness_forward, C=C, h=h, w=w))
    output, score = fwd(x, params)
    output, score = jax.block_until_ready((output, score))

    ref_out, ref_score = reference_forward(x, params, C=C, h=h, w=w)

    assert output.shape == (B, Cin, H, W)
    assert bool(jnp.allclose(output, ref_out, atol=2e-4, rtol=2e-4)), \
        "decoder output mismatch"
    assert abs(float(score) - float(ref_score)) < 2e-4, "interestingness score mismatch"
    assert bool(jnp.isfinite(score))

    print("KERNEL_OK")
</pallas_src>

<mosaic_0001>
module attributes {stable_mosaic.version = 11 : i64} {
  func.func @_fused_forward_kernel(%arg0: i32, %arg1: memref<4x8x64xf32, #tpu.memory_space<vmem>>, %arg2: memref<8x4xf32, #tpu.memory_space<smem>>, %arg3: memref<8xf32, #tpu.memory_space<smem>>, %arg4: memref<4x8xf32, #tpu.memory_space<smem>>, %arg5: memref<4xf32, #tpu.memory_space<smem>>, %arg6: memref<8x16x64xf32, #tpu.memory_space<vmem>>, %arg7: memref<1x16xf32, #tpu.memory_space<vmem>>, %arg8: memref<8x8x64xf32, #tpu.memory_space<vmem>>, %arg9: memref<8x8x64xf32, #tpu.memory_space<vmem>>, %arg10: memref<4x8x64xf32, #tpu.memory_space<vmem>>) attributes {dimension_semantics = [#tpu.dimension_semantics<arbitrary>], iteration_bounds = array<i64: 1>, scalar_prefetch = 0 : i64, scratch_operands = 0 : i64, tpu.core_type = #tpu.core_type<tc>, window_params = [{pipeline_mode = #tpu.pipeline_mode<synchronous>, transform_indices = @transform_0, window_bounds = array<i64: 4, 8, 64>}, {transform_indices = @transform_1, window_bounds = array<i64: 8, 4>}, {transform_indices = @transform_2, window_bounds = array<i64: 8>}, {transform_indices = @transform_3, window_bounds = array<i64: 4, 8>}, {transform_indices = @transform_4, window_bounds = array<i64: 4>}, {pipeline_mode = #tpu.pipeline_mode<synchronous>, transform_indices = @transform_5, window_bounds = array<i64: 8, 16, 64>}, {pipeline_mode = #tpu.pipeline_mode<synchronous>, transform_indices = @transform_6, window_bounds = array<i64: 1, 16>}, {pipeline_mode = #tpu.pipeline_mode<synchronous>, transform_indices = @transform_7, window_bounds = array<i64: 8, 8, 64>}, {pipeline_mode = #tpu.pipeline_mode<synchronous>, transform_indices = @transform_8, window_bounds = array<i64: 8, 8, 64>}, {pipeline_mode = #tpu.pipeline_mode<synchronous>, transform_indices = @transform_9, window_bounds = array<i64: 4, 8, 64>}]} {
    %c0 = arith.constant 0 : index
    %c0_0 = arith.constant 0 : index
    %c0_1 = arith.constant 0 : index
    %0 = vector.load %arg1[%c0, %c0_0, %c0_1] : memref<4x8x64xf32, #tpu.memory_space<vmem>>, vector<1x8x64xf32>
    %1 = vector.shape_cast %0 : vector<1x8x64xf32> to vector<8x64xf32>
    %c1 = arith.constant 1 : index
    %c0_2 = arith.constant 0 : index
    %c0_3 = arith.constant 0 : index
    %2 = vector.load %arg1[%c1, %c0_2, %c0_3] : memref<4x8x64xf32, #tpu.memory_space<vmem>>, vector<1x8x64xf32>
    %3 = vector.shape_cast %2 : vector<1x8x64xf32> to vector<8x64xf32>
    %c2 = arith.constant 2 : index
    %c0_4 = arith.constant 0 : index
    %c0_5 = arith.constant 0 : index
    %4 = vector.load %arg1[%c2, %c0_4, %c0_5] : memref<4x8x64xf32, #tpu.memory_space<vmem>>, vector<1x8x64xf32>
    %5 = vector.shape_cast %4 : vector<1x8x64xf32> to vector<8x64xf32>
    %c3 = arith.constant 3 : index
    %c0_6 = arith.constant 0 : index
    %c0_7 = arith.constant 0 : index
    %6 = vector.load %arg1[%c3, %c0_6, %c0_7] : memref<4x8x64xf32, #tpu.memory_space<vmem>>, vector<1x8x64xf32>
    %7 = vector.shape_cast %6 : vector<1x8x64xf32> to vector<8x64xf32>
    %c0_8 = arith.constant 0 : index
    %c0_9 = arith.constant 0 : index
    %8 = memref.load %arg2[%c0_8, %c0_9] : memref<8x4xf32, #tpu.memory_space<smem>>
    %9 = vector.broadcast %8 : f32 to vector<8x64xf32>
    %10 = arith.mulf %9, %1 : vector<8x64xf32>
    %c0_10 = arith.constant 0 : index
    %c1_11 = arith.constant 1 : index
    %11 = memref.load %arg2[%c0_10, %c1_11] : memref<8x4xf32, #tpu.memory_space<smem>>
    %12 = vector.broadcast %11 : f32 to vector<8x64xf32>
    %13 = arith.mulf %12, %3 : vector<8x64xf32>
    %14 = arith.addf %10, %13 : vector<8x64xf32>
    %c0_12 = arith.constant 0 : index
    %c2_13 = arith.constant 2 : index
    %15 = memref.load %arg2[%c0_12, %c2_13] : memref<8x4xf32, #tpu.memory_space<smem>>
    %16 = vector.broadcast %15 : f32 to vector<8x64xf32>
    %17 = arith.mulf %16, %5 : vector<8x64xf32>
    %18 = arith.addf %14, %17 : vector<8x64xf32>
    %c0_14 = arith.constant 0 : index
    %c3_15 = arith.constant 3 : index
    %19 = memref.load %arg2[%c0_14, %c3_15] : memref<8x4xf32, #tpu.memory_space<smem>>
    %20 = vector.broadcast %19 : f32 to vector<8x64xf32>
    %21 = arith.mulf %20, %7 : vector<8x64xf32>
    %22 = arith.addf %18, %21 : vector<8x64xf32>
    %c0_16 = arith.constant 0 : index
    %23 = memref.load %arg3[%c0_16] : memref<8xf32, #tpu.memory_space<smem>>
    %24 = vector.broadcast %23 : f32 to vector<8x64xf32>
    %25 = arith.addf %22, %24 : vector<8x64xf32>
    %cst = arith.constant 0.000000e+00 : f32
    %26 = vector.broadcast %cst : f32 to vector<8x64xf32>
    %27 = arith.maximumf %25, %26 : vector<8x64xf32>
    %c0_17 = arith.constant 0 : index
    %c0_18 = arith.constant 0 : index
    %c0_19 = arith.constant 0 : index
    %28 = vector.load %arg8[%c0_17, %c0_18, %c0_19] : memref<8x8x64xf32, #tpu.memory_space<vmem>>, vector<1x8x64xf32>
    %29 = vector.shape_cast %28 : vector<1x8x64xf32> to vector<8x64xf32>
    %30 = vector.shape_cast %27 : vector<8x64xf32> to vector<1x8x64xf32>
    tpu.vector_store %arg8[%c0_17, %c0_18, %c0_19], %30 {strides = array<i32>} : memref<8x8x64xf32, #tpu.memory_space<vmem>>, vector<1x8x64xf32>,
    %c1_20 = arith.constant 1 : index
    %c0_21 = arith.constant 0 : index
    %31 = memref.load %arg2[%c1_20, %c0_21] : memref<8x4xf32, #tpu.memory_space<smem>>
    %32 = vector.broadcast %31 : f32 to vector<8x64xf32>
    %33 = arith.mulf %32, %1 : vector<8x64xf32>
    %c1_22 = arith.constant 1 : index
    %c1_23 = arith.constant 1 : index
    %34 = memref.load %arg2[%c1_22, %c1_23] : memref<8x4xf32, #tpu.memory_space<smem>>
    %35 = vector.broadcast %34 : f32 to vector<8x64xf32>
    %36 = arith.mulf %35, %3 : vector<8x64xf32>
    %37 = arith.addf %33, %36 : vector<8x64xf32>
    %c1_24 = arith.constant 1 : index
    %c2_25 = arith.constant 2 : index
    %38 = memref.load %arg2[%c1_24, %c2_25] : memref<8x4xf32, #tpu.memory_space<smem>>
    %39 = vector.broadcast %38 : f32 to vector<8x64xf32>
    %40 = arith.mulf %39, %5 : vector<8x64xf32>
    %41 = arith.addf %37, %40 : vector<8x64xf32>
    %c1_26 = arith.constant 1 : index
    %c3_27 = arith.constant 3 : index
    %42 = memref.load %arg2[%c1_26, %c3_27] : memref<8x4xf32, #tpu.memory_space<smem>>
    %43 = vector.broadcast %42 : f32 to vector<8x64xf32>
    %44 = arith.mulf %43, %7 : vector<8x64xf32>
    %45 = arith.addf %41, %44 : vector<8x64xf32>
    %c1_28 = arith.constant 1 : index
    %46 = memref.load %arg3[%c1_28] : memref<8xf32, #tpu.memory_space<smem>>
    %47 = vector.broadcast %46 : f32 to vector<8x64xf32>
    %48 = arith.addf %45, %47 : vector<8x64xf32>
    %cst_29 = arith.constant 0.000000e+00 : f32
    %49 = vector.broadcast %cst_29 : f32 to vector<8x64xf32>
    %50 = arith.maximumf %48, %49 : vector<8x64xf32>
    %c1_30 = arith.constant 1 : index
    %c0_31 = arith.constant 0 : index
    %c0_32 = arith.constant 0 : index
    %51 = vector.load %arg8[%c1_30, %c0_31, %c0_32] : memref<8x8x64xf32, #tpu.memory_space<vmem>>, vector<1x8x64xf32>
    %52 = vector.shape_cast %51 : vector<1x8x64xf32> to vector<8x64xf32>
    %53 = vector.shape_cast %50 : vector<8x64xf32> to vector<1x8x64xf32>
    tpu.vector_store %arg8[%c1_30, %c0_31, %c0_32], %53 {strides = array<i32>} : memref<8x8x64xf32, #tpu.memory_space<vmem>>, vector<1x8x64xf32>,
    %c2_33 = arith.constant 2 : index
    %c0_34 = arith.constant 0 : index
    %54 = memref.load %arg2[%c2_33, %c0_34] : memref<8x4xf32, #tpu.memory_space<smem>>
    %55 = vector.broadcast %54 : f32 to vector<8x64xf32>
    %56 = arith.mulf %55, %1 : vector<8x64xf32>
    %c2_35 = arith.constant 2 : index
    %c1_36 = arith.constant 1 : index
    %57 = memref.load %arg2[%c2_35, %c1_36] : memref<8x4xf32, #tpu.memory_space<smem>>
    %58 = vector.broadcast %57 : f32 to vector<8x64xf32>
    %59 = arith.mulf %58, %3 : vector<8x64xf32>
    %60 = arith.addf %56, %59 : vector<8x64xf32>
    %c2_37 = arith.constant 2 : index
    %c2_38 = arith.constant 2 : index
    %61 = memref.load %arg2[%c2_37, %c2_38] : memref<8x4xf32, #tpu.memory_space<smem>>
    %62 = vector.broadcast %61 : f32 to vector<8x64xf32>
    %63 = arith.mulf %62, %5 : vector<8x64xf32>
    %64 = arith.addf %60, %63 : vector<8x64xf32>
    %c2_39 = arith.constant 2 : index
    %c3_40 = arith.constant 3 : index
    %65 = memref.load %arg2[%c2_39, %c3_40] : memref<8x4xf32, #tpu.memory_space<smem>>
    %66 = vector.broadcast %65 : f32 to vector<8x64xf32>
    %67 = arith.mulf %66, %7 : vector<8x64xf32>
    %68 = arith.addf %64, %67 : vector<8x64xf32>
    %c2_41 = arith.constant 2 : index
    %69 = memref.load %arg3[%c2_41] : memref<8xf32, #tpu.memory_space<smem>>
    %70 = vector.broadcast %69 : f32 to vector<8x64xf32>
    %71 = arith.addf %68, %70 : vector<8x64xf32>
    %cst_42 = arith.constant 0.000000e+00 : f32
    %72 = vector.broadcast %cst_42 : f32 to vector<8x64xf32>
    %73 = arith.maximumf %71, %72 : vector<8x64xf32>
    %c2_43 = arith.constant 2 : index
    %c0_44 = arith.constant 0 : index
    %c0_45 = arith.constant 0 : index
    %74 = vector.load %arg8[%c2_43, %c0_44, %c0_45] : memref<8x8x64xf32, #tpu.memory_space<vmem>>, vector<1x8x64xf32>
    %75 = vector.shape_cast %74 : vector<1x8x64xf32> to vector<8x64xf32>
    %76 = vector.shape_cast %73 : vector<8x64xf32> to vector<1x8x64xf32>
    tpu.vector_store %arg8[%c2_43, %c0_44, %c0_45], %76 {strides = array<i32>} : memref<8x8x64xf32, #tpu.memory_space<vmem>>, vector<1x8x64xf32>,
    %c3_46 = arith.constant 3 : index
    %c0_47 = arith.constant 0 : index
    %77 = memref.load %arg2[%c3_46, %c0_47] : memref<8x4xf32, #tpu.memory_space<smem>>
    %78 = vector.broadcast %77 : f32 to vector<8x64xf32>
    %79 = arith.mulf %78, %1 : vector<8x64xf32>
    %c3_48 = arith.constant 3 : index
    %c1_49 = arith.constant 1 : index
    %80 = memref.load %arg2[%c3_48, %c1_49] : memref<8x4xf32, #tpu.memory_space<smem>>
    %81 = vector.broadcast %80 : f32 to vector<8x64xf32>
    %82 = arith.mulf %81, %3 : vector<8x64xf32>
    %83 = arith.addf %79, %82 : vector<8x64xf32>
    %c3_50 = arith.constant 3 : index
    %c2_51 = arith.constant 2 : index
    %84 = memref.load %arg2[%c3_50, %c2_51] : memref<8x4xf32, #tpu.memory_space<smem>>
    %85 = vector.broadcast %84 : f32 to vector<8x64xf32>
    %86 = arith.mulf %85, %5 : vector<8x64xf32>
    %87 = arith.addf %83, %86 : vector<8x64xf32>
    %c3_52 = arith.constant 3 : index
    %c3_53 = arith.constant 3 : index
    %88 = memref.load %arg2[%c3_52, %c3_53] : memref<8x4xf32, #tpu.memory_space<smem>>
    %89 = vector.broadcast %88 : f32 to vector<8x64xf32>
    %90 = arith.mulf %89, %7 : vector<8x64xf32>
    %91 = arith.addf %87, %90 : vector<8x64xf32>
    %c3_54 = arith.constant 3 : index
    %92 = memref.load %arg3[%c3_54] : memref<8xf32, #tpu.memory_space<smem>>
    %93 = vector.broadcast %92 : f32 to vector<8x64xf32>
    %94 = arith.addf %91, %93 : vector<8x64xf32>
    %cst_55 = arith.constant 0.000000e+00 : f32
    %95 = vector.broadcast %cst_55 : f32 to vector<8x64xf32>
    %96 = arith.maximumf %94, %95 : vector<8x64xf32>
    %c3_56 = arith.constant 3 : index
    %c0_57 = arith.constant 0 : index
    %c0_58 = arith.constant 0 : index
    %97 = vector.load %arg8[%c3_56, %c0_57, %c0_58] : memref<8x8x64xf32, #tpu.memory_space<vmem>>, vector<1x8x64xf32>
    %98 = vector.shape_cast %97 : vector<1x8x64xf32> to vector<8x64xf32>
    %99 = vector.shape_cast %96 : vector<8x64xf32> to vector<1x8x64xf32>
    tpu.vector_store %arg8[%c3_56, %c0_57, %c0_58], %99 {strides = array<i32>} : memref<8x8x64xf32, #tpu.memory_space<vmem>>, vector<1x8x64xf32>,
    %c4 = arith.constant 4 : index
    %c0_59 = arith.constant 0 : index
    %100 = memref.load %arg2[%c4, %c0_59] : memref<8x4xf32, #tpu.memory_space<smem>>
    %101 = vector.broadcast %100 : f32 to vector<8x64xf32>
    %102 = arith.mulf %101, %1 : vector<8x64xf32>
    %c4_60 = arith.constant 4 : index
    %c1_61 = arith.constant 1 : index
    %103 = memref.load %arg2[%c4_60, %c1_61] : memref<8x4xf32, #tpu.memory_space<smem>>
    %104 = vector.broadcast %103 : f32 to vector<8x64xf32>
    %105 = arith.mulf %104, %3 : vector<8x64xf32>
    %106 = arith.addf %102, %105 : vector<8x64xf32>
    %c4_62 = arith.constant 4 : index
    %c2_63 = arith.constant 2 : index
    %107 = memref.load %arg2[%c4_62, %c2_63] : memref<8x4xf32, #tpu.memory_space<smem>>
    %108 = vector.broadcast %107 : f32 to vector<8x64xf32>
    %109 = arith.mulf %108, %5 : vector<8x64xf32>
    %110 = arith.addf %106, %109 : vector<8x64xf32>
    %c4_64 = arith.constant 4 : index
    %c3_65 = arith.constant 3 : index
    %111 = memref.load %arg2[%c4_64, %c3_65] : memref<8x4xf32, #tpu.memory_space<smem>>
    %112 = vector.broadcast %111 : f32 to vector<8x64xf32>
    %113 = arith.mulf %112, %7 : vector<8x64xf32>
    %114 = arith.addf %110, %113 : vector<8x64xf32>
    %c4_66 = arith.constant 4 : index
    %115 = memref.load %arg3[%c4_66] : memref<8xf32, #tpu.memory_space<smem>>
    %116 = vector.broadcast %115 : f32 to vector<8x64xf32>
    %117 = arith.addf %114, %116 : vector<8x64xf32>
    %cst_67 = arith.constant 0.000000e+00 : f32
    %118 = vector.broadcast %cst_67 : f32 to vector<8x64xf32>
    %119 = arith.maximumf %117, %118 : vector<8x64xf32>
    %c4_68 = arith.constant 4 : index
    %c0_69 = arith.constant 0 : index
    %c0_70 = arith.constant 0 : index
    %120 = vector.load %arg8[%c4_68, %c0_69, %c0_70] : memref<8x8x64xf32, #tpu.memory_space<vmem>>, vector<1x8x64xf32>
    %121 = vector.shape_cast %120 : vector<1x8x64xf32> to vector<8x64xf32>
    %122 = vector.shape_cast %119 : vector<8x64xf32> to vector<1x8x64xf32>
    tpu.vector_store %arg8[%c4_68, %c0_69, %c0_70], %122 {strides = array<i32>} : memref<8x8x64xf32, #tpu.memory_space<vmem>>, vector<1x8x64xf32>,
    %c5 = arith.constant 5 : index
    %c0_71 = arith.constant 0 : index
    %123 = memref.load %arg2[%c5, %c0_71] : memref<8x4xf32, #tpu.memory_space<smem>>
    %124 = vector.broadcast %123 : f32 to vector<8x64xf32>
    %125 = arith.mulf %124, %1 : vector<8x64xf32>
    %c5_72 = arith.constant 5 : index
    %c1_73 = arith.constant 1 : index
    %126 = memref.load %arg2[%c5_72, %c1_73] : memref<8x4xf32, #tpu.memory_space<smem>>
    %127 = vector.broadcast %126 : f32 to vector<8x64xf32>
    %128 = arith.mulf %127, %3 : vector<8x64xf32>
    %129 = arith.addf %125, %128 : vector<8x64xf32>
    %c5_74 = arith.constant 5 : index
    %c2_75 = arith.constant 2 : index
    %130 = memref.load %arg2[%c5_74, %c2_75] : memref<8x4xf32, #tpu.memory_space<smem>>
    %131 = vector.broadcast %130 : f32 to vector<8x64xf32>
    %132 = arith.mulf %131, %5 : vector<8x64xf32>
    %133 = arith.addf %129, %132 : vector<8x64xf32>
    %c5_76 = arith.constant 5 : index
    %c3_77 = arith.constant 3 : index
    %134 = memref.load %arg2[%c5_76, %c3_77] : memref<8x4xf32, #tpu.memory_space<smem>>
    %135 = vector.broadcast %134 : f32 to vector<8x64xf32>
    %136 = arith.mulf %135, %7 : vector<8x64xf32>
    %137 = arith.addf %133, %136 : vector<8x64xf32>
    %c5_78 = arith.constant 5 : index
    %138 = memref.load %arg3[%c5_78] : memref<8xf32, #tpu.memory_space<smem>>
    %139 = vector.broadcast %138 : f32 to vector<8x64xf32>
    %140 = arith.addf %137, %139 : vector<8x64xf32>
    %cst_79 = arith.constant 0.000000e+00 : f32
    %141 = vector.broadcast %cst_79 : f32 to vector<8x64xf32>
    %142 = arith.maximumf %140, %141 : vector<8x64xf32>
    %c5_80 = arith.constant 5 : index
    %c0_81 = arith.constant 0 : index
    %c0_82 = arith.constant 0 : index
    %143 = vector.load %arg8[%c5_80, %c0_81, %c0_82] : memref<8x8x64xf32, #tpu.memory_space<vmem>>, vector<1x8x64xf32>
    %144 = vector.shape_cast %143 : vector<1x8x64xf32> to vector<8x64xf32>
    %145 = vector.shape_cast %142 : vector<8x64xf32> to vector<1x8x64xf32>
    tpu.vector_store %arg8[%c5_80, %c0_81, %c0_82], %145 {strides = array<i32>} : memref<8x8x64xf32, #tpu.memory_space<vmem>>, vector<1x8x64xf32>,
    %c6 = arith.constant 6 : index
    %c0_83 = arith.constant 0 : index
    %146 = memref.load %arg2[%c6, %c0_83] : memref<8x4xf32, #tpu.memory_space<smem>>
    %147 = vector.broadcast %146 : f32 to vector<8x64xf32>
    %148 = arith.mulf %147, %1 : vector<8x64xf32>
    %c6_84 = arith.constant 6 : index
    %c1_85 = arith.constant 1 : index
    %149 = memref.load %arg2[%c6_84, %c1_85] : memref<8x4xf32, #tpu.memory_space<smem>>
    %150 = vector.broadcast %149 : f32 to vector<8x64xf32>
    %151 = arith.mulf %150, %3 : vector<8x64xf32>
    %152 = arith.addf %148, %151 : vector<8x64xf32>
    %c6_86 = arith.constant 6 : index
    %c2_87 = arith.constant 2 : index
    %153 = memref.load %arg2[%c6_86, %c2_87] : memref<8x4xf32, #tpu.memory_space<smem>>
    %154 = vector.broadcast %153 : f32 to vector<8x64xf32>
    %155 = arith.mulf %154, %5 : vector<8x64xf32>
    %156 = arith.addf %152, %155 : vector<8x64xf32>
    %c6_88 = arith.constant 6 : index
    %c3_89 = arith.constant 3 : index
    %157 = memref.load %arg2[%c6_88, %c3_89] : memref<8x4xf32, #tpu.memory_space<smem>>
    %158 = vector.broadcast %157 : f32 to vector<8x64xf32>
    %159 = arith.mulf %158, %7 : vector<8x64xf32>
    %160 = arith.addf %156, %159 : vector<8x64xf32>
    %c6_90 = arith.constant 6 : index
    %161 = memref.load %arg3[%c6_90] : memref<8xf32, #tpu.memory_space<smem>>
    %162 = vector.broadcast %161 : f32 to vector<8x64xf32>
    %163 = arith.addf %160, %162 : vector<8x64xf32>
    %cst_91 = arith.constant 0.000000e+00 : f32
    %164 = vector.broadcast %cst_91 : f32 to vector<8x64xf32>
    %165 = arith.maximumf %163, %164 : vector<8x64xf32>
    %c6_92 = arith.constant 6 : index
    %c0_93 = arith.constant 0 : index
    %c0_94 = arith.constant 0 : index
    %166 = vector.load %arg8[%c6_92, %c0_93, %c0_94] : memref<8x8x64xf32, #tpu.memory_space<vmem>>, vector<1x8x64xf32>
    %167 = vector.shape_cast %166 : vector<1x8x64xf32> to vector<8x64xf32>
    %168 = vector.shape_cast %165 : vector<8x64xf32> to vector<1x8x64xf32>
    tpu.vector_store %arg8[%c6_92, %c0_93, %c0_94], %168 {strides = array<i32>} : memref<8x8x64xf32, #tpu.memory_space<vmem>>, vector<1x8x64xf32>,
    %c7 = arith.constant 7 : index
    %c0_95 = arith.constant 0 : index
    %169 = memref.load %arg2[%c7, %c0_95] : memref<8x4xf32, #tpu.memory_space<smem>>
    %170 = vector.broadcast %169 : f32 to vector<8x64xf32>
    %171 = arith.mulf %170, %1 : vector<8x64xf32>
    %c7_96 = arith.constant 7 : index
    %c1_97 = arith.constant 1 : index
    %172 = memref.load %arg2[%c7_96, %c1_97] : memref<8x4xf32, #tpu.memory_space<smem>>
    %173 = vector.broadcast %172 : f32 to vector<8x64xf32>
    %174 = arith.mulf %173, %3 : vector<8x64xf32>
    %175 = arith.addf %171, %174 : vector<8x64xf32>
    %c7_98 = arith.constant 7 : index
    %c2_99 = arith.constant 2 : index
    %176 = memref.load %arg2[%c7_98, %c2_99] : memref<8x4xf32, #tpu.memory_space<smem>>
    %177 = vector.broadcast %176 : f32 to vector<8x64xf32>
    %178 = arith.mulf %177, %5 : vector<8x64xf32>
    %179 = arith.addf %175, %178 : vector<8x64xf32>
    %c7_100 = arith.constant 7 : index
    %c3_101 = arith.constant 3 : index
    %180 = memref.load %arg2[%c7_100, %c3_101] : memref<8x4xf32, #tpu.memory_space<smem>>
    %181 = vector.broadcast %180 : f32 to vector<8x64xf32>
    %182 = arith.mulf %181, %7 : vector<8x64xf32>
    %183 = arith.addf %179, %182 : vector<8x64xf32>
    %c7_102 = arith.constant 7 : index
    %184 = memref.load %arg3[%c7_102] : memref<8xf32, #tpu.memory_space<smem>>
    %185 = vector.broadcast %184 : f32 to vector<8x64xf32>
    %186 = arith.addf %183, %185 : vector<8x64xf32>
    %cst_103 = arith.constant 0.000000e+00 : f32
    %187 = vector.broadcast %cst_103 : f32 to vector<8x64xf32>
    %188 = arith.maximumf %186, %187 : vector<8x64xf32>
    %c7_104 = arith.constant 7 : index
    %c0_105 = arith.constant 0 : index
    %c0_106 = arith.constant 0 : index
    %189 = vector.load %arg8[%c7_104, %c0_105, %c0_106] : memref<8x8x64xf32, #tpu.memory_space<vmem>>, vector<1x8x64xf32>
    %190 = vector.shape_cast %189 : vector<1x8x64xf32> to vector<8x64xf32>
    %191 = vector.shape_cast %188 : vector<8x64xf32> to vector<1x8x64xf32>
    tpu.vector_store %arg8[%c7_104, %c0_105, %c0_106], %191 {strides = array<i32>} : memref<8x8x64xf32, #tpu.memory_space<vmem>>, vector<1x8x64xf32>,
    %c0_107 = arith.constant 0 : index
    %c0_108 = arith.constant 0 : index
    %c0_109 = arith.constant 0 : index
    %192 = vector.load %arg6[%c0_107, %c0_108, %c0_109] : memref<8x16x64xf32, #tpu.memory_space<vmem>>, vector<1x16x64xf32>
    %193 = vector.shape_cast %192 : vector<1x16x64xf32> to vector<16x64xf32>
    %c1_110 = arith.constant 1 : index
    %c0_111 = arith.constant 0 : index
    %c0_112 = arith.constant 0 : index
    %194 = vector.load %arg6[%c1_110, %c0_111, %c0_112] : memref<8x16x64xf32, #tpu.memory_space<vmem>>, vector<1x16x64xf32>
    %195 = vector.shape_cast %194 : vector<1x16x64xf32> to vector<16x64xf32>
    %c2_113 = arith.constant 2 : index
    %c0_114 = arith.constant 0 : index
    %c0_115 = arith.constant 0 : index
    %196 = vector.load %arg6[%c2_113, %c0_114, %c0_115] : memref<8x16x64xf32, #tpu.memory_space<vmem>>, vector<1x16x64xf32>
    %197 = vector.shape_cast %196 : vector<1x16x64xf32> to vector<16x64xf32>
    %c3_116 = arith.constant 3 : index
    %c0_117 = arith.constant 0 : index
    %c0_118 = arith.constant 0 : index
    %198 = vector.load %arg6[%c3_116, %c0_117, %c0_118] : memref<8x16x64xf32, #tpu.memory_space<vmem>>, vector<1x16x64xf32>
    %199 = vector.shape_cast %198 : vector<1x16x64xf32> to vector<16x64xf32>
    %c4_119 = arith.constant 4 : index
    %c0_120 = arith.constant 0 : index
    %c0_121 = arith.constant 0 : index
    %200 = vector.load %arg6[%c4_119, %c0_120, %c0_121] : memref<8x16x64xf32, #tpu.memory_space<vmem>>, vector<1x16x64xf32>
    %201 = vector.shape_cast %200 : vector<1x16x64xf32> to vector<16x64xf32>
    %c5_122 = arith.constant 5 : index
    %c0_123 = arith.constant 0 : index
    %c0_124 = arith.constant 0 : index
    %202 = vector.load %arg6[%c5_122, %c0_123, %c0_124] : memref<8x16x64xf32, #tpu.memory_space<vmem>>, vector<1x16x64xf32>
    %203 = vector.shape_cast %202 : vector<1x16x64xf32> to vector<16x64xf32>
    %c6_125 = arith.constant 6 : index
    %c0_126 = arith.constant 0 : index
    %c0_127 = arith.constant 0 : index
    %204 = vector.load %arg6[%c6_125, %c0_126, %c0_127] : memref<8x16x64xf32, #tpu.memory_space<vmem>>, vector<1x16x64xf32>
    %205 = vector.shape_cast %204 : vector<1x16x64xf32> to vector<16x64xf32>
    %c7_128 = arith.constant 7 : index
    %c0_129 = arith.constant 0 : index
    %c0_130 = arith.constant 0 : index
    %206 = vector.load %arg6[%c7_128, %c0_129, %c0_130] : memref<8x16x64xf32, #tpu.memory_space<vmem>>, vector<1x16x64xf32>
    %207 = vector.shape_cast %206 : vector<1x16x64xf32> to vector<16x64xf32>
    %cst_131 = arith.constant dense<0.000000e+00> : vector<8x16xf32>
    %208 = tpu.matmul %27, %193, %cst_131 {dimension_numbers = #tpu.dot_dimension_numbers<[1], [1], [0], [0], [0, 0, 1, 0], [], []>} : vector<8x64xf32>, vector<16x64xf32>, vector<8x16xf32> -> vector<8x16xf32>
    %209 = arith.mulf %27, %27 : vector<8x64xf32>
    %cst_132 = arith.constant dense<0.000000e+00> : vector<8xf32>
    %210 = vector.multi_reduction <add>, %209, %cst_132 [1] : vector<8x64xf32> to vector<8xf32>
    %211 = vector.shape_cast %210 : vector<8xf32> to vector<8x1xf32>
    %cst_133 = arith.constant dense<0.000000e+00> : vector<8x16xf32>
    %212 = tpu.matmul %50, %195, %cst_133 {dimension_numbers = #tpu.dot_dimension_numbers<[1], [1], [0], [0], [0, 0, 1, 0], [], []>} : vector<8x64xf32>, vector<16x64xf32>, vector<8x16xf32> -> vector<8x16xf32>
    %213 = arith.addf %208, %212 : vector<8x16xf32>
    %214 = arith.mulf %50, %50 : vector<8x64xf32>
    %cst_134 = arith.constant dense<0.000000e+00> : vector<8xf32>
    %215 = vector.multi_reduction <add>, %214, %cst_134 [1] : vector<8x64xf32> to vector<8xf32>
    %216 = vector.shape_cast %215 : vector<8xf32> to vector<8x1xf32>
    %217 = arith.addf %211, %216 : vector<8x1xf32>
    %cst_135 = arith.constant dense<0.000000e+00> : vector<8x16xf32>
    %218 = tpu.matmul %73, %197, %cst_135 {dimension_numbers = #tpu.dot_dimension_numbers<[1], [1], [0], [0], [0, 0, 1, 0], [], []>} : vector<8x64xf32>, vector<16x64xf32>, vector<8x16xf32> -> vector<8x16xf32>
    %219 = arith.addf %213, %218 : vector<8x16xf32>
    %220 = arith.mulf %73, %73 : vector<8x64xf32>
    %cst_136 = arith.constant dense<0.000000e+00> : vector<8xf32>
    %221 = vector.multi_reduction <add>, %220, %cst_136 [1] : vector<8x64xf32> to vector<8xf32>
    %222 = vector.shape_cast %221 : vector<8xf32> to vector<8x1xf32>
    %223 = arith.addf %217, %222 : vector<8x1xf32>
    %cst_137 = arith.constant dense<0.000000e+00> : vector<8x16xf32>
    %224 = tpu.matmul %96, %199, %cst_137 {dimension_numbers = #tpu.dot_dimension_numbers<[1], [1], [0], [0], [0, 0, 1, 0], [], []>} : vector<8x64xf32>, vector<16x64xf32>, vector<8x16xf32> -> vector<8x16xf32>
    %225 = arith.addf %219, %224 : vector<8x16xf32>
    %226 = arith.mulf %96, %96 : vector<8x64xf32>
    %cst_138 = arith.constant dense<0.000000e+00> : vector<8xf32>
    %227 = vector.multi_reduction <add>, %226, %cst_138 [1] : vector<8x64xf32> to vector<8xf32>
    %228 = vector.shape_cast %227 : vector<8xf32> to vector<8x1xf32>
    %229 = arith.addf %223, %228 : vector<8x1xf32>
    %cst_139 = arith.constant dense<0.000000e+00> : vector<8x16xf32>
    %230 = tpu.matmul %119, %201, %cst_139 {dimension_numbers = #tpu.dot_dimension_numbers<[1], [1], [0], [0], [0, 0, 1, 0], [], []>} : vector<8x64xf32>, vector<16x64xf32>, vector<8x16xf32> -> vector<8x16xf32>
    %231 = arith.addf %225, %230 : vector<8x16xf32>
    %232 = arith.mulf %119, %119 : vector<8x64xf32>
    %cst_140 = arith.constant dense<0.000000e+00> : vector<8xf32>
    %233 = vector.multi_reduction <add>, %232, %cst_140 [1] : vector<8x64xf32> to vector<8xf32>
    %234 = vector.shape_cast %233 : vector<8xf32> to vector<8x1xf32>
    %235 = arith.addf %229, %234 : vector<8x1xf32>
    %cst_141 = arith.constant dense<0.000000e+00> : vector<8x16xf32>
    %236 = tpu.matmul %142, %203, %cst_141 {dimension_numbers = #tpu.dot_dimension_numbers<[1], [1], [0], [0], [0, 0, 1, 0], [], []>} : vector<8x64xf32>, vector<16x64xf32>, vector<8x16xf32> -> vector<8x16xf32>
    %237 = arith.addf %231, %236 : vector<8x16xf32>
    %238 = arith.mulf %142, %142 : vector<8x64xf32>
    %cst_142 = arith.constant dense<0.000000e+00> : vector<8xf32>
    %239 = vector.multi_reduction <add>, %238, %cst_142 [1] : vector<8x64xf32> to vector<8xf32>
    %240 = vector.shape_cast %239 : vector<8xf32> to vector<8x1xf32>
    %241 = arith.addf %235, %240 : vector<8x1xf32>
    %cst_143 = arith.constant dense<0.000000e+00> : vector<8x16xf32>
    %242 = tpu.matmul %165, %205, %cst_143 {dimension_numbers = #tpu.dot_dimension_numbers<[1], [1], [0], [0], [0, 0, 1, 0], [], []>} : vector<8x64xf32>, vector<16x64xf32>, vector<8x16xf32> -> vector<8x16xf32>
    %243 = arith.addf %237, %242 : vector<8x16xf32>
    %244 = arith.mulf %165, %165 : vector<8x64xf32>
    %cst_144 = arith.constant dense<0.000000e+00> : vector<8xf32>
    %245 = vector.multi_reduction <add>, %244, %cst_144 [1] : vector<8x64xf32> to vector<8xf32>
    %246 = vector.shape_cast %245 : vector<8xf32> to vector<8x1xf32>
    %247 = arith.addf %241, %246 : vector<8x1xf32>
    %cst_145 = arith.constant dense<0.000000e+00> : vector<8x16xf32>
    %248 = tpu.matmul %188, %207, %cst_145 {dimension_numbers = #tpu.dot_dimension_numbers<[1], [1], [0], [0], [0, 0, 1, 0], [], []>} : vector<8x64xf32>, vector<16x64xf32>, vector<8x16xf32> -> vector<8x16xf32>
    %249 = arith.addf %243, %248 : vector<8x16xf32>
    %250 = arith.mulf %188, %188 : vector<8x64xf32>
    %cst_146 = arith.constant dense<0.000000e+00> : vector<8xf32>
    %251 = vector.multi_reduction <add>, %250, %cst_146 [1] : vector<8x64xf32> to vector<8xf32>
    %252 = vector.shape_cast %251 : vector<8xf32> to vector<8x1xf32>
    %253 = arith.addf %247, %252 : vector<8x1xf32>
    %254 = math.sqrt %253 : vector<8x1xf32>
    %c0_147 = arith.constant 0 : index
    %c0_148 = arith.constant 0 : index
    %255 = vector.load %arg7[%c0_147, %c0_148] : memref<1x16xf32, #tpu.memory_space<vmem>>, vector<1x16xf32>
    %256 = vector.broadcast %254 : vector<8x1xf32> to vector<8x16xf32>
    %257 = vector.broadcast %255 : vector<1x16xf32> to vector<8x16xf32>
    %258 = arith.mulf %256, %257 : vector<8x16xf32>
    %cst_149 = arith.constant 9.99999993E-9 : f32
    %259 = vector.broadcast %cst_149 : f32 to vector<8x16xf32>
    %260 = arith.maximumf %258, %259 : vector<8x16xf32>
    %261 = arith.divf %249, %260 : vector<8x16xf32>
    %cst_150 = arith.constant dense<0xFF800000> : vector<8xf32>
    %262 = vector.multi_reduction <maximumf>, %261, %cst_150 [1] : vector<8x16xf32> to vector<8xf32>
    %263 = vector.shape_cast %262 : vector<8xf32> to vector<8x1xf32>
    %264 = vector.broadcast %263 : vector<8x1xf32> to vector<8x16xf32>
    %265 = arith.subf %261, %264 : vector<8x16xf32>
    %266 = math.exp %265 : vector<8x16xf32>
    %cst_151 = arith.constant dense<0.000000e+00> : vector<8xf32>
    %267 = vector.multi_reduction <add>, %266, %cst_151 [1] : vector<8x16xf32> to vector<8xf32>
    %268 = vector.shape_cast %267 : vector<8xf32> to vector<8x1xf32>
    %269 = vector.broadcast %268 : vector<8x1xf32> to vector<8x16xf32>
    %270 = arith.divf %266, %269 : vector<8x16xf32>
    %cst_152 = arith.constant dense<0.000000e+00> : vector<8x64xf32>
    %271 = tpu.matmul %270, %193, %cst_152 {dimension_numbers = #tpu.dot_dimension_numbers<[1], [0], [0], [1], [0, 0, 1, 1], [], []>} : vector<8x16xf32>, vector<16x64xf32>, vector<8x64xf32> -> vector<8x64xf32>
    %c0_153 = arith.constant 0 : index
    %c0_154 = arith.constant 0 : index
    %c0_155 = arith.constant 0 : index
    %272 = vector.load %arg9[%c0_153, %c0_154, %c0_155] : memref<8x8x64xf32, #tpu.memory_space<vmem>>, vector<1x8x64xf32>
    %273 = vector.shape_cast %272 : vector<1x8x64xf32> to vector<8x64xf32>
    %274 = vector.shape_cast %271 : vector<8x64xf32> to vector<1x8x64xf32>
    tpu.vector_store %arg9[%c0_153, %c0_154, %c0_155], %274 {strides = array<i32>} : memref<8x8x64xf32, #tpu.memory_space<vmem>>, vector<1x8x64xf32>,
    %cst_156 = arith.constant dense<0.000000e+00> : vector<8x64xf32>
    %275 = tpu.matmul %270, %195, %cst_156 {dimension_numbers = #tpu.dot_dimension_numbers<[1], [0], [0], [1], [0, 0, 1, 1], [], []>} : vector<8x16xf32>, vector<16x64xf32>, vector<8x64xf32> -> vector<8x64xf32>
    %c1_157 = arith.constant 1 : index
    %c0_158 = arith.constant 0 : index
    %c0_159 = arith.constant 0 : index
    %276 = vector.load %arg9[%c1_157, %c0_158, %c0_159] : memref<8x8x64xf32, #tpu.memory_space<vmem>>, vector<1x8x64xf32>
    %277 = vector.shape_cast %276 : vector<1x8x64xf32> to vector<8x64xf32>
    %278 = vector.shape_cast %275 : vector<8x64xf32> to vector<1x8x64xf32>
    tpu.vector_store %arg9[%c1_157, %c0_158, %c0_159], %278 {strides = array<i32>} : memref<8x8x64xf32, #tpu.memory_space<vmem>>, vector<1x8x64xf32>,
    %cst_160 = arith.constant dense<0.000000e+00> : vector<8x64xf32>
    %279 = tpu.matmul %270, %197, %cst_160 {dimension_numbers = #tpu.dot_dimension_numbers<[1], [0], [0], [1], [0, 0, 1, 1], [], []>} : vector<8x16xf32>, vector<16x64xf32>, vector<8x64xf32> -> vector<8x64xf32>
    %c2_161 = arith.constant 2 : index
    %c0_162 = arith.constant 0 : index
    %c0_163 = arith.constant 0 : index
    %280 = vector.load %arg9[%c2_161, %c0_162, %c0_163] : memref<8x8x64xf32, #tpu.memory_space<vmem>>, vector<1x8x64xf32>
    %281 = vector.shape_cast %280 : vector<1x8x64xf32> to vector<8x64xf32>
    %282 = vector.shape_cast %279 : vector<8x64xf32> to vector<1x8x64xf32>
    tpu.vector_store %arg9[%c2_161, %c0_162, %c0_163], %282 {strides = array<i32>} : memref<8x8x64xf32, #tpu.memory_space<vmem>>, vector<1x8x64xf32>,
    %cst_164 = arith.constant dense<0.000000e+00> : vector<8x64xf32>
    %283 = tpu.matmul %270, %199, %cst_164 {dimension_numbers = #tpu.dot_dimension_numbers<[1], [0], [0], [1], [0, 0, 1, 1], [], []>} : vector<8x16xf32>, vector<16x64xf32>, vector<8x64xf32> -> vector<8x64xf32>
    %c3_165 = arith.constant 3 : index
    %c0_166 = arith.constant 0 : index
    %c0_167 = arith.constant 0 : index
    %284 = vector.load %arg9[%c3_165, %c0_166, %c0_167] : memref<8x8x64xf32, #tpu.memory_space<vmem>>, vector<1x8x64xf32>
    %285 = vector.shape_cast %284 : vector<1x8x64xf32> to vector<8x64xf32>
    %286 = vector.shape_cast %283 : vector<8x64xf32> to vector<1x8x64xf32>
    tpu.vector_store %arg9[%c3_165, %c0_166, %c0_167], %286 {strides = array<i32>} : memref<8x8x64xf32, #tpu.memory_space<vmem>>, vector<1x8x64xf32>,
    %cst_168 = arith.constant dense<0.000000e+00> : vector<8x64xf32>
    %287 = tpu.matmul %270, %201, %cst_168 {dimension_numbers = #tpu.dot_dimension_numbers<[1], [0], [0], [1], [0, 0, 1, 1], [], []>} : vector<8x16xf32>, vector<16x64xf32>, vector<8x64xf32> -> vector<8x64xf32>
    %c4_169 = arith.constant 4 : index
    %c0_170 = arith.constant 0 : index
    %c0_171 = arith.constant 0 : index
    %288 = vector.load %arg9[%c4_169, %c0_170, %c0_171] : memref<8x8x64xf32, #tpu.memory_space<vmem>>, vector<1x8x64xf32>
    %289 = vector.shape_cast %288 : vector<1x8x64xf32> to vector<8x64xf32>
    %290 = vector.shape_cast %287 : vector<8x64xf32> to vector<1x8x64xf32>
    tpu.vector_store %arg9[%c4_169, %c0_170, %c0_171], %290 {strides = array<i32>} : memref<8x8x64xf32, #tpu.memory_space<vmem>>, vector<1x8x64xf32>,
    %cst_172 = arith.constant dense<0.000000e+00> : vector<8x64xf32>
    %291 = tpu.matmul %270, %203, %cst_172 {dimension_numbers = #tpu.dot_dimension_numbers<[1], [0], [0], [1], [0, 0, 1, 1], [], []>} : vector<8x16xf32>, vector<16x64xf32>, vector<8x64xf32> -> vector<8x64xf32>
    %c5_173 = arith.constant 5 : index
    %c0_174 = arith.constant 0 : index
    %c0_175 = arith.constant 0 : index
    %292 = vector.load %arg9[%c5_173, %c0_174, %c0_175] : memref<8x8x64xf32, #tpu.memory_space<vmem>>, vector<1x8x64xf32>
    %293 = vector.shape_cast %292 : vector<1x8x64xf32> to vector<8x64xf32>
    %294 = vector.shape_cast %291 : vector<8x64xf32> to vector<1x8x64xf32>
    tpu.vector_store %arg9[%c5_173, %c0_174, %c0_175], %294 {strides = array<i32>} : memref<8x8x64xf32, #tpu.memory_space<vmem>>, vector<1x8x64xf32>,
    %cst_176 = arith.constant dense<0.000000e+00> : vector<8x64xf32>
    %295 = tpu.matmul %270, %205, %cst_176 {dimension_numbers = #tpu.dot_dimension_numbers<[1], [0], [0], [1], [0, 0, 1, 1], [], []>} : vector<8x16xf32>, vector<16x64xf32>, vector<8x64xf32> -> vector<8x64xf32>
    %c6_177 = arith.constant 6 : index
    %c0_178 = arith.constant 0 : index
    %c0_179 = arith.constant 0 : index
    %296 = vector.load %arg9[%c6_177, %c0_178, %c0_179] : memref<8x8x64xf32, #tpu.memory_space<vmem>>, vector<1x8x64xf32>
    %297 = vector.shape_cast %296 : vector<1x8x64xf32> to vector<8x64xf32>
    %298 = vector.shape_cast %295 : vector<8x64xf32> to vector<1x8x64xf32>
    tpu.vector_store %arg9[%c6_177, %c0_178, %c0_179], %298 {strides = array<i32>} : memref<8x8x64xf32, #tpu.memory_space<vmem>>, vector<1x8x64xf32>,
    %cst_180 = arith.constant dense<0.000000e+00> : vector<8x64xf32>
    %299 = tpu.matmul %270, %207, %cst_180 {dimension_numbers = #tpu.dot_dimension_numbers<[1], [0], [0], [1], [0, 0, 1, 1], [], []>} : vector<8x16xf32>, vector<16x64xf32>, vector<8x64xf32> -> vector<8x64xf32>
    %c7_181 = arith.constant 7 : index
    %c0_182 = arith.constant 0 : index
    %c0_183 = arith.constant 0 : index
    %300 = vector.load %arg9[%c7_181, %c0_182, %c0_183] : memref<8x8x64xf32, #tpu.memory_space<vmem>>, vector<1x8x64xf32>
    %301 = vector.shape_cast %300 : vector<1x8x64xf32> to vector<8x64xf32>
    %302 = vector.shape_cast %299 : vector<8x64xf32> to vector<1x8x64xf32>
    tpu.vector_store %arg9[%c7_181, %c0_182, %c0_183], %302 {strides = array<i32>} : memref<8x8x64xf32, #tpu.memory_space<vmem>>, vector<1x8x64xf32>,
    %c0_184 = arith.constant 0 : index
    %c0_185 = arith.constant 0 : index
    %303 = memref.load %arg4[%c0_184, %c0_185] : memref<4x8xf32, #tpu.memory_space<smem>>
    %304 = vector.broadcast %303 : f32 to vector<8x64xf32>
    %305 = arith.mulf %304, %271 : vector<8x64xf32>
    %c0_186 = arith.constant 0 : index
    %c1_187 = arith.constant 1 : index
    %306 = memref.load %arg4[%c0_186, %c1_187] : memref<4x8xf32, #tpu.memory_space<smem>>
    %307 = vector.broadcast %306 : f32 to vector<8x64xf32>
    %308 = arith.mulf %307, %275 : vector<8x64xf32>
    %309 = arith.addf %305, %308 : vector<8x64xf32>
    %c0_188 = arith.constant 0 : index
    %c2_189 = arith.constant 2 : index
    %310 = memref.load %arg4[%c0_188, %c2_189] : memref<4x8xf32, #tpu.memory_space<smem>>
    %311 = vector.broadcast %310 : f32 to vector<8x64xf32>
    %312 = arith.mulf %311, %279 : vector<8x64xf32>
    %313 = arith.addf %309, %312 : vector<8x64xf32>
    %c0_190 = arith.constant 0 : index
    %c3_191 = arith.constant 3 : index
    %314 = memref.load %arg4[%c0_190, %c3_191] : memref<4x8xf32, #tpu.memory_space<smem>>
    %315 = vector.broadcast %314 : f32 to vector<8x64xf32>
    %316 = arith.mulf %315, %283 : vector<8x64xf32>
    %317 = arith.addf %313, %316 : vector<8x64xf32>
    %c0_192 = arith.constant 0 : index
    %c4_193 = arith.constant 4 : index
    %318 = memref.load %arg4[%c0_192, %c4_193] : memref<4x8xf32, #tpu.memory_space<smem>>
    %319 = vector.broadcast %318 : f32 to vector<8x64xf32>
    %320 = arith.mulf %319, %287 : vector<8x64xf32>
    %321 = arith.addf %317, %320 : vector<8x64xf32>
    %c0_194 = arith.constant 0 : index
    %c5_195 = arith.constant 5 : index
    %322 = memref.load %arg4[%c0_194, %c5_195] : memref<4x8xf32, #tpu.memory_space<smem>>
    %323 = vector.broadcast %322 : f32 to vector<8x64xf32>
    %324 = arith.mulf %323, %291 : vector<8x64xf32>
    %325 = arith.addf %321, %324 : vector<8x64xf32>
    %c0_196 = arith.constant 0 : index
    %c6_197 = arith.constant 6 : index
    %326 = memref.load %arg4[%c0_196, %c6_197] : memref<4x8xf32, #tpu.memory_space<smem>>
    %327 = vector.broadcast %326 : f32 to vector<8x64xf32>
    %328 = arith.mulf %327, %295 : vector<8x64xf32>
    %329 = arith.addf %325, %328 : vector<8x64xf32>
    %c0_198 = arith.constant 0 : index
    %c7_199 = arith.constant 7 : index
    %330 = memref.load %arg4[%c0_198, %c7_199] : memref<4x8xf32, #tpu.memory_space<smem>>
    %331 = vector.broadcast %330 : f32 to vector<8x64xf32>
    %332 = arith.mulf %331, %299 : vector<8x64xf32>
    %333 = arith.addf %329, %332 : vector<8x64xf32>
    %c0_200 = arith.constant 0 : index
    %334 = memref.load %arg5[%c0_200] : memref<4xf32, #tpu.memory_space<smem>>
    %335 = vector.broadcast %334 : f32 to vector<8x64xf32>
    %336 = arith.addf %333, %335 : vector<8x64xf32>
    %c0_201 = arith.constant 0 : index
    %c0_202 = arith.constant 0 : index
    %c0_203 = arith.constant 0 : index
    %337 = vector.load %arg10[%c0_201, %c0_202, %c0_203] : memref<4x8x64xf32, #tpu.memory_space<vmem>>, vector<1x8x64xf32>
    %338 = vector.shape_cast %337 : vector<1x8x64xf32> to vector<8x64xf32>
    %339 = vector.shape_cast %336 : vector<8x64xf32> to vector<1x8x64xf32>
    tpu.vector_store %arg10[%c0_201, %c0_202, %c0_203], %339 {strides = array<i32>} : memref<4x8x64xf32, #tpu.memory_space<vmem>>, vector<1x8x64xf32>,
    %c1_204 = arith.constant 1 : index
    %c0_205 = arith.constant 0 : index
    %340 = memref.load %arg4[%c1_204, %c0_205] : memref<4x8xf32, #tpu.memory_space<smem>>
    %341 = vector.broadcast %340 : f32 to vector<8x64xf32>
    %342 = arith.mulf %341, %271 : vector<8x64xf32>
    %c1_206 = arith.constant 1 : index
    %c1_207 = arith.constant 1 : index
    %343 = memref.load %arg4[%c1_206, %c1_207] : memref<4x8xf32, #tpu.memory_space<smem>>
    %344 = vector.broadcast %343 : f32 to vector<8x64xf32>
    %345 = arith.mulf %344, %275 : vector<8x64xf32>
    %346 = arith.addf %342, %345 : vector<8x64xf32>
    %c1_208 = arith.constant 1 : index
    %c2_209 = arith.constant 2 : index
    %347 = memref.load %arg4[%c1_208, %c2_209] : memref<4x8xf32, #tpu.memory_space<smem>>
    %348 = vector.broadcast %347 : f32 to vector<8x64xf32>
    %349 = arith.mulf %348, %279 : vector<8x64xf32>
    %350 = arith.addf %346, %349 : vector<8x64xf32>
    %c1_210 = arith.constant 1 : index
    %c3_211 = arith.constant 3 : index
    %351 = memref.load %arg4[%c1_210, %c3_211] : memref<4x8xf32, #tpu.memory_space<smem>>
    %352 = vector.broadcast %351 : f32 to vector<8x64xf32>
    %353 = arith.mulf %352, %283 : vector<8x64xf32>
    %354 = arith.addf %350, %353 : vector<8x64xf32>
    %c1_212 = arith.constant 1 : index
    %c4_213 = arith.constant 4 : index
    %355 = memref.load %arg4[%c1_212, %c4_213] : memref<4x8xf32, #tpu.memory_space<smem>>
    %356 = vector.broadcast %355 : f32 to vector<8x64xf32>
    %357 = arith.mulf %356, %287 : vector<8x64xf32>
    %358 = arith.addf %354, %357 : vector<8x64xf32>
    %c1_214 = arith.constant 1 : index
    %c5_215 = arith.constant 5 : index
    %359 = memref.load %arg4[%c1_214, %c5_215] : memref<4x8xf32, #tpu.memory_space<smem>>
    %360 = vector.broadcast %359 : f32 to vector<8x64xf32>
    %361 = arith.mulf %360, %291 : vector<8x64xf32>
    %362 = arith.addf %358, %361 : vector<8x64xf32>
    %c1_216 = arith.constant 1 : index
    %c6_217 = arith.constant 6 : index
    %363 = memref.load %arg4[%c1_216, %c6_217] : memref<4x8xf32, #tpu.memory_space<smem>>
    %364 = vector.broadcast %363 : f32 to vector<8x64xf32>
    %365 = arith.mulf %364, %295 : vector<8x64xf32>
    %366 = arith.addf %362, %365 : vector<8x64xf32>
    %c1_218 = arith.constant 1 : index
    %c7_219 = arith.constant 7 : index
    %367 = memref.load %arg4[%c1_218, %c7_219] : memref<4x8xf32, #tpu.memory_space<smem>>
    %368 = vector.broadcast %367 : f32 to vector<8x64xf32>
    %369 = arith.mulf %368, %299 : vector<8x64xf32>
    %370 = arith.addf %366, %369 : vector<8x64xf32>
    %c1_220 = arith.constant 1 : index
    %371 = memref.load %arg5[%c1_220] : memref<4xf32, #tpu.memory_space<smem>>
    %372 = vector.broadcast %371 : f32 to vector<8x64xf32>
    %373 = arith.addf %370, %372 : vector<8x64xf32>
    %c1_221 = arith.constant 1 : index
    %c0_222 = arith.constant 0 : index
    %c0_223 = arith.constant 0 : index
    %374 = vector.load %arg10[%c1_221, %c0_222, %c0_223] : memref<4x8x64xf32, #tpu.memory_space<vmem>>, vector<1x8x64xf32>
    %375 = vector.shape_cast %374 : vector<1x8x64xf32> to vector<8x64xf32>
    %376 = vector.shape_cast %373 : vector<8x64xf32> to vector<1x8x64xf32>
    tpu.vector_store %arg10[%c1_221, %c0_222, %c0_223], %376 {strides = array<i32>} : memref<4x8x64xf32, #tpu.memory_space<vmem>>, vector<1x8x64xf32>,
    %c2_224 = arith.constant 2 : index
    %c0_225 = arith.constant 0 : index
    %377 = memref.load %arg4[%c2_224, %c0_225] : memref<4x8xf32, #tpu.memory_space<smem>>
    %378 = vector.broadcast %377 : f32 to vector<8x64xf32>
    %379 = arith.mulf %378, %271 : vector<8x64xf32>
    %c2_226 = arith.constant 2 : index
    %c1_227 = arith.constant 1 : index
    %380 = memref.load %arg4[%c2_226, %c1_227] : memref<4x8xf32, #tpu.memory_space<smem>>
    %381 = vector.broadcast %380 : f32 to vector<8x64xf32>
    %382 = arith.mulf %381, %275 : vector<8x64xf32>
    %383 = arith.addf %379, %382 : vector<8x64xf32>
    %c2_228 = arith.constant 2 : index
    %c2_229 = arith.constant 2 : index
    %384 = memref.load %arg4[%c2_228, %c2_229] : memref<4x8xf32, #tpu.memory_space<smem>>
    %385 = vector.broadcast %384 : f32 to vector<8x64xf32>
    %386 = arith.mulf %385, %279 : vector<8x64xf32>
    %387 = arith.addf %383, %386 : vector<8x64xf32>
    %c2_230 = arith.constant 2 : index
    %c3_231 = arith.constant 3 : index
    %388 = memref.load %arg4[%c2_230, %c3_231] : memref<4x8xf32, #tpu.memory_space<smem>>
    %389 = vector.broadcast %388 : f32 to vector<8x64xf32>
    %390 = arith.mulf %389, %283 : vector<8x64xf32>
    %391 = arith.addf %387, %390 : vector<8x64xf32>
    %c2_232 = arith.constant 2 : index
    %c4_233 = arith.constant 4 : index
    %392 = memref.load %arg4[%c2_232, %c4_233] : memref<4x8xf32, #tpu.memory_space<smem>>
    %393 = vector.broadcast %392 : f32 to vector<8x64xf32>
    %394 = arith.mulf %393, %287 : vector<8x64xf32>
    %395 = arith.addf %391, %394 : vector<8x64xf32>
    %c2_234 = arith.constant 2 : index
    %c5_235 = arith.constant 5 : index
    %396 = memref.load %arg4[%c2_234, %c5_235] : memref<4x8xf32, #tpu.memory_space<smem>>
    %397 = vector.broadcast %396 : f32 to vector<8x64xf32>
    %398 = arith.mulf %397, %291 : vector<8x64xf32>
    %399 = arith.addf %395, %398 : vector<8x64xf32>
    %c2_236 = arith.constant 2 : index
    %c6_237 = arith.constant 6 : index
    %400 = memref.load %arg4[%c2_236, %c6_237] : memref<4x8xf32, #tpu.memory_space<smem>>
    %401 = vector.broadcast %400 : f32 to vector<8x64xf32>
    %402 = arith.mulf %401, %295 : vector<8x64xf32>
    %403 = arith.addf %399, %402 : vector<8x64xf32>
    %c2_238 = arith.constant 2 : index
    %c7_239 = arith.constant 7 : index
    %404 = memref.load %arg4[%c2_238, %c7_239] : memref<4x8xf32, #tpu.memory_space<smem>>
    %405 = vector.broadcast %404 : f32 to vector<8x64xf32>
    %406 = arith.mulf %405, %299 : vector<8x64xf32>
    %407 = arith.addf %403, %406 : vector<8x64xf32>
    %c2_240 = arith.constant 2 : index
    %408 = memref.load %arg5[%c2_240] : memref<4xf32, #tpu.memory_space<smem>>
    %409 = vector.broadcast %408 : f32 to vector<8x64xf32>
    %410 = arith.addf %407, %409 : vector<8x64xf32>
    %c2_241 = arith.constant 2 : index
    %c0_242 = arith.constant 0 : index
    %c0_243 = arith.constant 0 : index
    %411 = vector.load %arg10[%c2_241, %c0_242, %c0_243] : memref<4x8x64xf32, #tpu.memory_space<vmem>>, vector<1x8x64xf32>
    %412 = vector.shape_cast %411 : vector<1x8x64xf32> to vector<8x64xf32>
    %413 = vector.shape_cast %410 : vector<8x64xf32> to vector<1x8x64xf32>
    tpu.vector_store %arg10[%c2_241, %c0_242, %c0_243], %413 {strides = array<i32>} : memref<4x8x64xf32, #tpu.memory_space<vmem>>, vector<1x8x64xf32>,
    %c3_244 = arith.constant 3 : index
    %c0_245 = arith.constant 0 : index
    %414 = memref.load %arg4[%c3_244, %c0_245] : memref<4x8xf32, #tpu.memory_space<smem>>
    %415 = vector.broadcast %414 : f32 to vector<8x64xf32>
    %416 = arith.mulf %415, %271 : vector<8x64xf32>
    %c3_246 = arith.constant 3 : index
    %c1_247 = arith.constant 1 : index
    %417 = memref.load %arg4[%c3_246, %c1_247] : memref<4x8xf32, #tpu.memory_space<smem>>
    %418 = vector.broadcast %417 : f32 to vector<8x64xf32>
    %419 = arith.mulf %418, %275 : vector<8x64xf32>
    %420 = arith.addf %416, %419 : vector<8x64xf32>
    %c3_248 = arith.constant 3 : index
    %c2_249 = arith.constant 2 : index
    %421 = memref.load %arg4[%c3_248, %c2_249] : memref<4x8xf32, #tpu.memory_space<smem>>
    %422 = vector.broadcast %421 : f32 to vector<8x64xf32>
    %423 = arith.mulf %422, %279 : vector<8x64xf32>
    %424 = arith.addf %420, %423 : vector<8x64xf32>
    %c3_250 = arith.constant 3 : index
    %c3_251 = arith.constant 3 : index
    %425 = memref.load %arg4[%c3_250, %c3_251] : memref<4x8xf32, #tpu.memory_space<smem>>
    %426 = vector.broadcast %425 : f32 to vector<8x64xf32>
    %427 = arith.mulf %426, %283 : vector<8x64xf32>
    %428 = arith.addf %424, %427 : vector<8x64xf32>
    %c3_252 = arith.constant 3 : index
    %c4_253 = arith.constant 4 : index
    %429 = memref.load %arg4[%c3_252, %c4_253] : memref<4x8xf32, #tpu.memory_space<smem>>
    %430 = vector.broadcast %429 : f32 to vector<8x64xf32>
    %431 = arith.mulf %430, %287 : vector<8x64xf32>
    %432 = arith.addf %428, %431 : vector<8x64xf32>
    %c3_254 = arith.constant 3 : index
    %c5_255 = arith.constant 5 : index
    %433 = memref.load %arg4[%c3_254, %c5_255] : memref<4x8xf32, #tpu.memory_space<smem>>
    %434 = vector.broadcast %433 : f32 to vector<8x64xf32>
    %435 = arith.mulf %434, %291 : vector<8x64xf32>
    %436 = arith.addf %432, %435 : vector<8x64xf32>
    %c3_256 = arith.constant 3 : index
    %c6_257 = arith.constant 6 : index
    %437 = memref.load %arg4[%c3_256, %c6_257] : memref<4x8xf32, #tpu.memory_space<smem>>
    %438 = vector.broadcast %437 : f32 to vector<8x64xf32>
    %439 = arith.mulf %438, %295 : vector<8x64xf32>
    %440 = arith.addf %436, %439 : vector<8x64xf32>
    %c3_258 = arith.constant 3 : index
    %c7_259 = arith.constant 7 : index
    %441 = memref.load %arg4[%c3_258, %c7_259] : memref<4x8xf32, #tpu.memory_space<smem>>
    %442 = vector.broadcast %441 : f32 to vector<8x64xf32>
    %443 = arith.mulf %442, %299 : vector<8x64xf32>
    %444 = arith.addf %440, %443 : vector<8x64xf32>
    %c3_260 = arith.constant 3 : index
    %445 = memref.load %arg5[%c3_260] : memref<4xf32, #tpu.memory_space<smem>>
    %446 = vector.broadcast %445 : f32 to vector<8x64xf32>
    %447 = arith.addf %444, %446 : vector<8x64xf32>
    %c3_261 = arith.constant 3 : index
    %c0_262 = arith.constant 0 : index
    %c0_263 = arith.constant 0 : index
    %448 = vector.load %arg10[%c3_261, %c0_262, %c0_263] : memref<4x8x64xf32, #tpu.memory_space<vmem>>, vector<1x8x64xf32>
    %449 = vector.shape_cast %448 : vector<1x8x64xf32> to vector<8x64xf32>
    %450 = vector.shape_cast %447 : vector<8x64xf32> to vector<1x8x64xf32>
    tpu.vector_store %arg10[%c3_261, %c0_262, %c0_263], %450 {strides = array<i32>} : memref<4x8x64xf32, #tpu.memory_space<vmem>>, vector<1x8x64xf32>,
    return
  }
  func.func @transform_0(%arg0: i32) -> (i32, i32, i32) {
    %c0_i32 = arith.constant 0 : i32
    %c0_i32_0 = arith.constant 0 : i32
    %c0_i32_1 = arith.constant 0 : i32
    %c0_i32_2 = arith.constant 0 : i32
    return %c0_i32, %c0_i32_0, %c0_i32_1 : i32, i32, i32
  }
  func.func @transform_1(%arg0: i32) -> (i32, i32) {
    %c0_i32 = arith.constant 0 : i32
    %c0_i32_0 = arith.constant 0 : i32
    %c0_i32_1 = arith.constant 0 : i32
    return %c0_i32, %c0_i32_0 : i32, i32
  }
  func.func @transform_2(%arg0: i32) -> i32 {
    %c0_i32 = arith.constant 0 : i32
    %c0_i32_0 = arith.constant 0 : i32
    return %c0_i32 : i32
  }
  func.func @transform_3(%arg0: i32) -> (i32, i32) {
    %c0_i32 = arith.constant 0 : i32
    %c0_i32_0 = arith.constant 0 : i32
    %c0_i32_1 = arith.constant 0 : i32
    return %c0_i32, %c0_i32_0 : i32, i32
  }
  func.func @transform_4(%arg0: i32) -> i32 {
    %c0_i32 = arith.constant 0 : i32
    %c0_i32_0 = arith.constant 0 : i32
    return %c0_i32 : i32
  }
  func.func @transform_5(%arg0: i32) -> (i32, i32, i32) {
    %c0_i32 = arith.constant 0 : i32
    %c0_i32_0 = arith.constant 0 : i32
    %c0_i32_1 = arith.constant 0 : i32
    %c0_i32_2 = arith.constant 0 : i32
    return %c0_i32, %c0_i32_0, %c0_i32_1 : i32, i32, i32
  }
  func.func @transform_6(%arg0: i32) -> (i32, i32) {
    %c0_i32 = arith.constant 0 : i32
    %c0_i32_0 = arith.constant 0 : i32
    %c0_i32_1 = arith.constant 0 : i32
    return %c0_i32, %c0_i32_0 : i32, i32
  }
  func.func @transform_7(%arg0: i32) -> (i32, i32, i32) {
    %c0_i32 = arith.constant 0 : i32
    %c0_i32_0 = arith.constant 0 : i32
    %c0_i32_1 = arith.constant 0 : i32
    %c0_i32_2 = arith.constant 0 : i32
    return %c0_i32, %c0_i32_0, %c0_i32_1 : i32, i32, i32
  }
  func.func @transform_8(%arg0: i32) -> (i32, i32, i32) {
    %c0_i32 = arith.constant 0 : i32
    %c0_i32_0 = arith.constant 0 : i32
    %c0_i32_1 = arith.constant 0 : i32
    %c0_i32_2 = arith.constant 0 : i32
    return %c0_i32, %c0_i32_0, %c0_i32_1 : i32, i32, i32
  }
  func.func @transform_9(%arg0: i32) -> (i32, i32, i32) {
    %c0_i32 = arith.constant 0 : i32
    %c0_i32_0 = arith.constant 0 : i32
    %c0_i32_1 = arith.constant 0 : i32
    %c0_i32_2 = arith.constant 0 : i32
    return %c0_i32, %c0_i32_0, %c0_i32_1 : i32, i32, i32
  }
}

</mosaic_0001>

<bundles_post_ra>
// kernel: interestingness_forward.1
= control target key start
LH: loop header
LB: loop body
LE: loop exit
PB: predicated region body
PF: predicated region fallthrough
CT: control target
= control target key end

     0   :  { %15 = vsyncpa [#allocation3], 0  ;;  %s2751_s0 = inlined_call_operand.vmem [shape: f32[4,8,64], index: 0, kind: input, shape index: {}]   ;;  %s2752_s1 = inlined_call_operand.vmem [shape: f32[8,4], index: 1, kind: input, shape index: {}]   ;;  %s2753_s2 = inlined_call_operand.vmem [shape: f32[8], index: 2, kind: input, shape index: {}]   ;;  %s2754_s3 = inlined_call_operand.vmem [shape: f32[4,8], index: 3, kind: input, shape index: {}]   ;;  %s2755_s4 = inlined_call_operand.vmem [shape: f32[4], index: 4, kind: input, shape index: {}]   ;;  %s2756_s5 = inlined_call_operand.vmem [shape: f32[8,16,64], index: 5, kind: input, shape index: {}]   ;;  %s2757_s6 = inlined_call_operand.vmem [shape: f32[1,16], index: 6, kind: input, shape index: {}]   ;;  %s2758_s7 = inlined_call_operand.vmem [shape: f32[8,8,64], index: 7, kind: output, shape index: {0}]   ;;  %s2759_s8 = inlined_call_operand.vmem [shape: f32[8,8,64], index: 8, kind: output, shape index: {1}]   ;;  %s2760_s9 = inlined_call_operand.vmem [shape: f32[4,8,64], index: 9, kind: output, shape index: {2}]  }
   0x1   :  { %16 = vsyncpa [#allocation5], 0  ;;  %s36_s11 = sshll.u32 %s2753_s2, 4  ;;  %s37_s11 = int_to_ptr.vmem [resolvable:$true] %s36_s11 }
   0x2   :  { %17 = vsyncpa [#allocation8], 0  ;;  %s26_s14 = sshll.u32 %s2752_s1, 4  ;;  %s2101_s15 = scalar_lea.vmem %s37_s11, 16  ;;  %s27_s14 = int_to_ptr.vmem [resolvable:$true] %s26_s14 }
   0x3   :  { %p2102_p0 = scmp.ne.s32.totalorder %s37_s11, %s2101_s15  ;;  %p2106_p1 = scmp.lt.s32.totalorder %s37_s11, %s37_s11 }
   0x4   :  { %p2107_p2 = scmp.lt.s32.totalorder %s2101_s15, %s2101_s15 }
   0x6   :  { %p2108_p3 = por %p2107_p2, %p2106_p1 }
   0x8   :  { %p2109_p4 = pnand %p2108_p3, %p2102_p0 }
   0xa   :  { %2112 = shalt.err (!%p2109_p4)
}
   0xb   :  { %s2155_s16 = smov [#allocation4]   ;;  %s2113_s17 = scalar_lea.vmem %s27_s14, 128 }
   0xc   :  { %39 = dma.vmem_to_smem %s37_s11, 16, %s2155_s16, [#allocation5]  }
   0xd   :  { %p2114_p5 = scmp.ne.s32.totalorder %s27_s14, %s2113_s17  ;;  %p2118_p6 = scmp.lt.s32.totalorder %s27_s14, %s27_s14 }
   0xe   :  { %p2119_p7 = scmp.lt.s32.totalorder %s2113_s17, %s2113_s17 }
  0x10   :  { %p2120_p8 = por %p2119_p7, %p2118_p6 }
  0x12   :  { %p2121_p9 = pnand %p2120_p8, %p2114_p5 }
  0x14   :  { %2124 = shalt.err (!%p2121_p9)
}
  0x15   :  { %s2156_s2 = smov [#allocation2]   ;;  %s46_s19 = sshll.u32 %s2754_s3, 4  ;;  %s47_s19 = int_to_ptr.vmem [resolvable:$true] %s46_s19 }
  0x16   :  { %29 = dma.vmem_to_smem %s27_s14, 128, %s2156_s2, [#allocation3]  }
  0x17   :  { %s56_s22 = sshll.u32 %s2755_s4, 4  ;;  %s2125_s23 = scalar_lea.vmem %s47_s19, 64  ;;  %s57_s22 = int_to_ptr.vmem [resolvable:$true] %s56_s22 }
  0x18   :  { %p2126_p10 = scmp.ne.s32.totalorder %s47_s19, %s2125_s23  ;;  %p2130_p11 = scmp.lt.s32.totalorder %s47_s19, %s47_s19 }
  0x19   :  { %p2131_p12 = scmp.lt.s32.totalorder %s2125_s23, %s2125_s23 }
  0x1b   :  { %p2132_p13 = por %p2131_p12, %p2130_p11 }
  0x1d   :  { %p2133_p0 = pnand %p2132_p13, %p2126_p10 }
  0x1f   :  { %2136 = shalt.err (!%p2133_p0)
}
  0x20   :  { %s2157_s24 = smov [#allocation6]   ;;  %s2137_s25 = scalar_lea.vmem %s57_s22, 16 }
  0x21   :  { %49 = dma.vmem_to_smem %s47_s19, 64, %s2157_s24, [#allocation5]  }
  0x22   :  { %p2138_p1 = scmp.ne.s32.totalorder %s57_s22, %s2137_s25  ;;  %p2142_p2 = scmp.lt.s32.totalorder %s57_s22, %s57_s22 }
  0x23   :  { %p2143_p3 = scmp.lt.s32.totalorder %s2137_s25, %s2137_s25 }
  0x25   :  { %p2144_p4 = por %p2143_p3, %p2142_p2 }
  0x27   :  { %p2145_p5 = pnand %p2144_p4, %p2138_p1 }
  0x29   :  { %2148 = shalt.err (!%p2145_p5)
}
  0x2a   :  { %s2158_s3 = smov [#allocation7]  }
  0x2b   :  { %59 = dma.vmem_to_smem %s57_s22, 16, %s2158_s3, [#allocation8]  }
  0x2c   :  { %2149 = dma.done.wait [#allocation3], 128  }
  0x2d   :  { %2150 = vsyncadd [#allocation3], 4294967168 }
  0x2e   :  { %2151 = dma.done.wait [#allocation5], 80  }
  0x2f   :  { %2152 = vsyncadd [#allocation5], 4294967216 }
  0x30   :  { %2153 = dma.done.wait [#allocation8], 16  }
  0x31   :  { %2154 = vsyncadd [#allocation8], 4294967280 }
  0x32   :  { %76 = sfence }
  0x33   :  { %vm103_vm0 = vcmask 523264   ;;  %v1768_v0 = vld [vmem:[%s2756_s5 + $0x20] sm:$0xff]  ;;  %v1769_v1 = vld [vmem:[%s2756_s5 + $0x28] sm:$0xff]  ;;  %v2159_v2 = vmov 0.0|0.0   ;;  %vm2160_vm2 = vmmov 0   ;;  %v2161_v5 = vmov 0.0  }
  0x34   :  { %2025 = vmatprep.subr.bf16.mxu0 %v2159_v2  ;;  %vm2233_vm1 = vmpackc.low %vm103_vm0, %vm103_vm0  ;;  %v2237_v4 = vpack.c.bf16 %v1769_v1, %v1768_v0  ;;  %1923 = vmatprep.mubr.msk.f32.mxu0 %vm2160_vm2, %v2161_v5  ;;  %s1730_s29 = sld [smem:[#allocation2 + $0x100]]  ;;  %s1731_s30 = sld [smem:[#allocation2 + $0x101]]  ;;  %v2254_v6 = vld [vmem:[%s2751_s0] sm:$0xff]  ;;  %v2259_v7 = vld [vmem:[%s2751_s0 + $0x8] sm:$0xff]  ;;  %vm970_vm5 = vcmask 130048  }
  0x35   :  { %s2241_s10 = sld [smem:[#allocation2 + $0x102]]  ;;  %s2243_s11 = sld [smem:[#allocation2 + $0x103]]  ;;  %2017 = vmatprep.subr.bf16.mxu1 %v2159_v2  ;;  %1909 = vmatprep.mubr.msk.f32.mxu1 %vm2160_vm2, %v2161_v5  ;;  %v2269_v8 = vld [vmem:[%s2751_s0 + $0x10] sm:$0xff]  ;;  %v2274_v9 = vld [vmem:[%s2751_s0 + $0x18] sm:$0xff]  ;;  %v1772_v46 = vld [vmem:[%s2756_s5 + $0x40] sm:$0xff] }
  0x36   :  { %2028 = vmatpush3.bf16.xpose.msk.msra.mxu0 %vm2233_vm1, %v2237_v4  ;;  %s2261_s16 = sld [smem:[#allocation4 + $0x2]]  ;;  %s2263_s17 = sld [smem:[#allocation2 + $0x180]]  ;;  %v1766_v10 = vld [vmem:[%s2756_s5 + $0x10] sm:$0xff]  ;;  %v1767_v11 = vld [vmem:[%s2756_s5 + $0x18] sm:$0xff]  ;;  %v1773_v47 = vld [vmem:[%s2756_s5 + $0x48] sm:$0xff] }
  0x37   :  { %2029 = vmatprep.subr.bf16.mxu0 %v2159_v2  ;;  %s2276_s20 = sld [smem:[#allocation2 + $0x181]]  ;;  %s2278_s21 = sld [smem:[#allocation2 + $0x182]]  ;;  %v1770_v12 = vld [vmem:[%s2756_s5 + $0x30] sm:$0xff]  ;;  %v1771_v13 = vld [vmem:[%s2756_s5 + $0x38] sm:$0xff]  ;;  %v2296_v14 = vpack.c.bf16 %v1767_v11, %v1766_v10  ;;  %v2378_v60 = vpack.c.bf16 %v1773_v47, %v1772_v46  ;;  %v252_v11 = vld [vmem:[%s2756_s5] sm:$0xff] }
  0x38   :  { %s2280_s22 = sld [smem:[#allocation2 + $0x183]]  ;;  %s2298_s12 = sld [smem:[#allocation2 + $0x200]]  ;;  %v2317_v23 = vpack.c.bf16 %v1771_v13, %v1770_v12  ;;  %v253_v12 = vld [vmem:[%s2756_s5 + $0x8] sm:$0xff] }
  0x39   :  { %s2282_s23 = sld [smem:[#allocation4 + $0x3]]  ;;  %s2300_s13 = sld [smem:[#allocation2 + $0x201]]  ;;  %2020 = vmatpush3.bf16.xpose.msk.msra.mxu1 %vm2233_vm1, %v2296_v14 }
  0x3a   :  { %v127_v15 = vstv %s1730_s29  ;;  %v130_v16 = vstv %s1731_s30  ;;  %s2302_s14 = sld [smem:[#allocation2 + $0x202]]  ;;  %s2304_s15 = sld [smem:[#allocation2 + $0x203]]  ;;  %2021 = vmatprep.subr.bf16.mxu1 %v2159_v2 }
  0x3b   :  { %v128_v17 = vmul.f32 %v127_v15, %v2254_v6  ;;  %v131_v18 = vmul.f32 %v2259_v7, %v130_v16  ;;  %v134_v19 = vstv %s2241_s10  ;;  %v138_v20 = vstv %s2243_s11  ;;  %s2313_s2 = sld [smem:[#allocation2 + $0x80]]  ;;  %s2320_s29 = sld [smem:[#allocation2 + $0x81]] }
  0x3c   :  { %v135_v21 = vmul.f32 %v2269_v8, %v134_v19  ;;  %v139_v22 = vmul.f32 %v2274_v9, %v138_v20  ;;  %v148_v24 = vstv %s2263_s17  ;;  %s2322_s30 = sld [smem:[#allocation2 + $0x82]]  ;;  %s2328_s10 = sld [smem:[#allocation4 + $0x4]]  ;;  %v142_v29 = vstv %s2261_s16 }
  0x3d   :  { %v132_v25 = vadd.f32 %v131_v18, %v128_v17  ;;  %v149_v26 = vmul.f32 %v148_v24, %v2254_v6  ;;  %v151_v27 = vstv %s2276_s20  ;;  %v155_v28 = vstv %s2278_s21  ;;  %s2330_s11 = sld [smem:[#allocation2 + $0x83]]  ;;  %s2336_s17 = sld [smem:[#allocation2 + $0x280]] }
  0x3e   :  { %v152_v30 = vmul.f32 %v2259_v7, %v151_v27  ;;  %v156_v31 = vmul.f32 %v2269_v8, %v155_v28  ;;  %v159_v32 = vstv %s2280_s22  ;;  %s2338_s1 = sld [smem:[#allocation2 + $0x281]]  ;;  %v169_v35 = vstv %s2298_s12  ;;  %s2343_s18 = sld [smem:[#allocation2 + $0x282]] }
  0x3f   :  { %v136_v33 = vadd.f32 %v135_v21, %v132_v25  ;;  %v160_v34 = vmul.f32 %v2274_v9, %v159_v32  ;;  %v172_v36 = vstv %s2300_s13  ;;  %s2345_s16 = sld [smem:[#allocation2 + $0x283]]  ;;  %v170_v38 = vmul.f32 %v169_v35, %v2254_v6  ;;  %s2353_s19 = sld [smem:[#allocation4 + $0x1]] }
  0x40   :  { %v153_v37 = vadd.f32 %v152_v30, %v149_v26  ;;  %v173_v39 = vmul.f32 %v2259_v7, %v172_v36  ;;  %v176_v40 = vstv %s2302_s14  ;;  %v163_v42 = vstv %s2282_s23  ;;  %s2363_s23 = sld [smem:[#allocation2]]  ;;  %s2368_s25 = sld [smem:[#allocation2 + $0x1]] }
  0x41   :  { %v140_v41 = vadd.f32 %v139_v22, %v136_v33  ;;  %v177_v43 = vmul.f32 %v2269_v8, %v176_v40  ;;  %v180_v44 = vstv %s2304_s15  ;;  %v106_v50 = vstv %s2313_s2  ;;  %s2370_s3 = sld [smem:[#allocation2 + $0x2]]  ;;  %s2374_s4 = sld [smem:[#allocation2 + $0x3]]  ;;  %v1775_v40 = vld [vmem:[%s2756_s5 + $0x58] sm:$0xff] }
  0x42   :  { %v157_v45 = vadd.f32 %v156_v31, %v153_v37  ;;  %v174_v48 = vadd.f32 %v173_v39, %v170_v38  ;;  %v181_v49 = vmul.f32 %v2274_v9, %v180_v44  ;;  %v107_v52 = vmul.f32 %v106_v50, %v2254_v6  ;;  %s2382_s0 = sld [smem:[#allocation4 + $0x5]]  ;;  %s2384_s26 = sld [smem:[#allocation2 + $0x300]]  ;;  %v1774_v39 = vld [vmem:[%s2756_s5 + $0x50] sm:$0xff] }
  0x43   :  { %v143_v51 = vadd.f32 %v142_v29, %v140_v41  ;;  %v109_v53 = vstv %s2320_s29  ;;  %v113_v54 = vstv %s2322_s30  ;;  %v184_v61 = vstv %s2328_s10  ;;  %s2393_s14 = sld [smem:[#allocation2 + $0x301]]  ;;  %s2406_s29 = sld [smem:[#allocation2 + $0x302]] }
  0x44   :  { %v161_v55 = vadd.f32 %v160_v34, %v157_v45  ;;  %v178_v56 = vadd.f32 %v177_v43, %v174_v48  ;;  %v110_v57 = vmul.f32 %v2259_v7, %v109_v53  ;;  %v114_v58 = vmul.f32 %v2269_v8, %v113_v54  ;;  %s2408_s30 = sld [smem:[#allocation2 + $0x303]]  ;;  %s2418_s10 = sld [smem:[#allocation4]] }
  0x45   :  { %v2376_v59 = vmax.f32 %v143_v51, 0.0  ;;  %v117_v62 = vstv %s2330_s11  ;;  %v190_v13 = vstv %s2336_s17  ;;  %v193_v15 = vstv %s2338_s1  ;;  %s2426_s11 = sld [smem:[#allocation2 + $0x380]]  ;;  %s2452_s21 = sld [smem:[#allocation4 + $0x6]] }
  0x46   :  { %v164_v63 = vadd.f32 %v163_v42, %v161_v55  ;;  %v182_v0 = vadd.f32 %v181_v49, %v178_v56  ;;  %v111_v1 = vadd.f32 %v110_v57, %v107_v52  ;;  %v118_v10 = vmul.f32 %v2274_v9, %v117_v62  ;;  %s2454_s22 = sld [smem:[#allocation2 + $0x383]]  ;;  %s1827_s20 = sld [smem:[#allocation6 + $0x80]] }
  0x47   :  { %1735 = vst.msk [vmem:[%s2758_s7 + $0x10] sm:$0xff] %vm103_vm0, %v2376_v59  ;;  %1924 = vmatmul.mubr.msk.f32.vlgmr.msra.gmra.mrb[0].mxu0 %vm103_vm0, %v2376_v59  ;;  %v197_v16 = vstv %s2343_s18  ;;  %v201_v17 = vstv %s2345_s16  ;;  %v191_v21 = vmul.f32 %v190_v13, %v2254_v6  ;;  %v121_v22 = vstv %s2353_s19  ;;  %s2437_s18 = sld [smem:[#allocation2 + $0x381]]  ;;  %s2439_s16 = sld [smem:[#allocation2 + $0x382]] }
  0x48   :  { %2032 = vmatpush3.bf16.xpose.msk.msra.mxu0 %vm2233_vm1, %v2317_v23  ;;  %1930 = vmatprep.mubr.msk.f32.mxu0 %vm2160_vm2, %v2161_v5  ;;  %v2415_v18 = vmax.f32 %v164_v63, 0.0  ;;  %v185_v19 = vadd.f32 %v184_v61, %v182_v0  ;;  %v115_v20 = vadd.f32 %v114_v58, %v111_v1  ;;  %v2422_v24 = vpack.c.bf16 %v253_v12, %v252_v11  ;;  %s1820_s24 = sld [smem:[#allocation6 + $0x1]]  ;;  %s2625_s27 = sld [smem:[#allocation6 + $0x182]] }
  0x49   :  { %2033 = vmatprep.subr.bf16.mxu0 %v2159_v2  ;;  %v194_v25 = vmul.f32 %v2259_v7, %v193_v15  ;;  %v198_v26 = vmul.f32 %v2269_v8, %v197_v16  ;;  %v202_v29 = vmul.f32 %v2274_v9, %v201_v17  ;;  %v85_v30 = vstv %s2363_s23  ;;  %s1828_s23 = sld [smem:[#allocation6 + $0x81]]  ;;  %s2631_s13 = sld [smem:[#allocation6 + $0x3]] }
  0x4a   :  { %1741 = vst.msk [vmem:[%s2758_s7 + $0x18] sm:$0xff] %vm103_vm0, %v2415_v18  ;;  %v2433_v27 = vmax.f32 %v185_v19, 0.0  ;;  %v119_v28 = vadd.f32 %v118_v10, %v115_v20  ;;  %v86_v32 = vmul.f32 %v85_v30, %v2254_v6  ;;  %v88_v33 = vstv %s2368_s25  ;;  %v1776_v30 = vld [vmem:[%s2756_s5 + $0x60] sm:$0xff]  ;;  %s1838_s25 = sld [smem:[#allocation6 + $0x101]]  ;;  %s2635_s15 = sld [smem:[#allocation6 + $0x103]] }
  0x4b   :  { %v195_v31 = vadd.f32 %v194_v25, %v191_v21  ;;  %v92_v34 = vstv %s2370_s3  ;;  %v89_v36 = vmul.f32 %v2259_v7, %v88_v33  ;;  %v96_v38 = vstv %s2374_s4  ;;  %s1848_s3 = sld [smem:[#allocation6 + $0x181]]  ;;  %s2619_s4 = sld [smem:[#allocation6 + $0x2]] }
  0x4c   :  { %1747 = vst.msk [vmem:[%s2758_s7 + $0x20] sm:$0xff] %vm103_vm0, %v2433_v27  ;;  %v122_v35 = vadd.f32 %v121_v22, %v119_v28  ;;  %v93_v37 = vmul.f32 %v2269_v8, %v92_v34  ;;  %v205_v42 = vstv %s2382_s0  ;;  %v97_v43 = vmul.f32 %v2274_v9, %v96_v38  ;;  %s2621_s0 = sld [smem:[#allocation6 + $0x82]]  ;;  %s2637_s2 = sld [smem:[#allocation6 + $0x183]] }
  0x4d   :  { %v199_v41 = vadd.f32 %v198_v26, %v195_v31  ;;  %v211_v44 = vstv %s2384_s26  ;;  %v90_v46 = vadd.f32 %v89_v36, %v86_v32  ;;  %v214_v48 = vstv %s2393_s14  ;;  %s2485_s26 = sld [smem:[#allocation4 + $0x7]]  ;;  %v1777_v31 = vld [vmem:[%s2756_s5 + $0x68] sm:$0xff]  ;;  %s2633_s14 = sld [smem:[#allocation6 + $0x83]] }
  0x4e   :  { %v123_v45 = vmax.f32 %v122_v35, 0.0  ;;  %v212_v47 = vmul.f32 %v211_v44, %v2254_v6  ;;  %v215_v50 = vmul.f32 %v2259_v7, %v214_v48  ;;  %v218_v51 = vstv %s2406_s29  ;;  %v1779_v44 = vld [vmem:[%s2756_s5 + $0x78] sm:$0xff]  ;;  %s2651_s17 = sld [smem:[#allocation6 + $0x104]]  ;;  %s2667_s19 = sld [smem:[#allocation6 + $0x105]] }
  0x4f   :  { %1931 = vmatmul.mubr.msk.f32.vlgmr.msra.gmra.mrb[0].mxu0 %vm103_vm0, %v2415_v18  ;;  %v203_v49 = vadd.f32 %v202_v29, %v199_v41  ;;  %v222_v52 = vstv %s2408_s30  ;;  %v2477_v53 = vpack.c.bf16 %v1775_v40, %v1774_v39  ;;  %v94_v54 = vadd.f32 %v93_v37, %v90_v46  ;;  %s2653_s1 = sld [smem:[#allocation6 + $0x184]]  ;;  %s2701_s28 = sld [smem:[#allocation6 + $0x187]] }
  0x50   :  { %2036 = vmatpush3.bf16.xpose.msk.msra.mxu0 %vm2233_vm1, %v2378_v60  ;;  %1937 = vmatprep.mubr.msk.f32.mxu0 %vm2160_vm2, %v2161_v5  ;;  %1729 = vst.msk [vmem:[%s2758_s7 + $0x8] sm:$0xff] %vm103_vm0, %v123_v45  ;;  %v100_v55 = vstv %s2418_s10  ;;  %v219_v56 = vmul.f32 %v2269_v8, %v218_v51  ;;  %v216_v58 = vadd.f32 %v215_v50, %v212_v47  ;;  %v232_v62 = vstv %s2426_s11  ;;  %s2643_s10 = sld [smem:[#allocation6 + $0x4]]  ;;  %s2717_s29 = sld [smem:[#allocation7 + $0x3]] }
  0x51   :  { %2037 = vmatprep.subr.bf16.mxu0 %v2159_v2  ;;  %1910 = vmatmul.mubr.msk.f32.vlgmr.msra.gmra.mrb[0].mxu1 %vm103_vm0, %v123_v45  ;;  %v206_v57 = vadd.f32 %v205_v42, %v203_v49  ;;  %v223_v61 = vmul.f32 %v2274_v9, %v222_v52  ;;  %v98_v63 = vadd.f32 %v97_v43, %v94_v54  ;;  %v235_v1 = vstv %s2437_s18  ;;  %v1778_v43 = vld [vmem:[%s2756_s5 + $0x70] sm:$0xff]  ;;  %s2645_s11 = sld [smem:[#allocation6 + $0x84]]  ;;  %s2661_s5 = sld [smem:[#allocation6 + $0x85]] }
  0x52   :  { %2024 = vmatpush3.bf16.xpose.msk.msra.mxu1 %vm2233_vm1, %v2422_v24  ;;  %1916 = vmatprep.mubr.msk.f32.mxu1 %vm2160_vm2, %v2161_v5  ;;  %v233_v0 = vmul.f32 %v232_v62, %v2254_v6  ;;  %v239_v10 = vstv %s2439_s16  ;;  %v220_v12 = vadd.f32 %v219_v56, %v216_v58  ;;  %v236_v13 = vmul.f32 %v2259_v7, %v235_v1 }
  0x53   :  { %v207_v11 = vmax.f32 %v206_v57, 0.0  ;;  %v240_v15 = vmul.f32 %v2269_v8, %v239_v10  ;;  %2049 = vmatprep.subr.bf16.mxu1 %v2159_v2  ;;  %v101_v16 = vadd.f32 %v100_v55, %v98_v63  ;;  %v226_v17 = vstv %s2452_s21  ;;  %s1837_s21 = sld [smem:[#allocation6 + $0x100]] }
  0x54   :  { %v243_v19 = vstv %s2454_s22  ;;  %v522_v20 = vmul.f32 %v2376_v59, %v2376_v59  ;;  %v224_v6 = vadd.f32 %v223_v61, %v220_v12  ;;  %v237_v21 = vadd.f32 %v236_v13, %v233_v0  ;;  %s1847_s22 = sld [smem:[#allocation6 + $0x180]] }
  0x55   :  { %1753 = vst.msk [vmem:[%s2758_s7 + $0x28] sm:$0xff] %vm103_vm0, %v207_v11  ;;  %v244_v7 = vmul.f32 %v2274_v9, %v243_v19  ;;  %v102_v22 = vmax.f32 %v101_v16, 0.0  ;;  %v607_v25 = vmul.f32 %v2415_v18, %v2415_v18  ;;  %v247_v9 = vstv %s2485_s26  ;;  %s2623_s26 = sld [smem:[#allocation6 + $0x102]] }
  0x56   :  { %v523_v8 = vsel %vm103_vm0, %v522_v20, 0.0  ;;  %v227_v26 = vadd.f32 %v226_v17, %v224_v6  ;;  %v241_v59 = vadd.f32 %v240_v15, %v237_v21  ;;  %v437_v28 = vmul.f32 %v123_v45, %v123_v45  ;;  %v1804_v17 = vld [vmem:[%s2757_s6] ss:$0 sm:$0xff]  ;;  %s1560_s6 = sld [smem:[#allocation6]] }
  0x57   :  { %1938 = vmatmul.mubr.msk.f32.vlgmr.msra.gmra.mrb[0].mxu0 %vm103_vm0, %v2433_v27  ;;  %524 = vadd.xlane.f32.xlu1 %v523_v8  ;;  %104 = vst.msk [vmem:[%s2758_s7] sm:$0xff] %vm103_vm0, %v102_v22  ;;  %v275_v18 = vmul.f32 %v102_v22, %v102_v22  ;;  %v608_v29 = vsel %vm103_vm0, %v607_v25, 0.0  ;;  %v777_v35 = vmul.f32 %v207_v11, %v207_v11 }
  0x58   :  { %2040 = vmatpush3.bf16.xpose.msk.msra.mxu0 %vm2233_vm1, %v2477_v53  ;;  %1944 = vmatprep.mubr.msk.f32.mxu0 %vm2160_vm2, %v2161_v5  ;;  %v228_v32 = vmax.f32 %v227_v26, 0.0  ;;  %v245_v33 = vadd.f32 %v244_v7, %v241_v59  ;;  %v2543_v37 = vpack.c.bf16 %v1777_v31, %v1776_v30  ;;  %v438_v38 = vsel %vm103_vm0, %v437_v28, 0.0 }
  0x59   :  { %2041 = vmatprep.subr.bf16.mxu0 %v2159_v2  ;;  %1917 = vmatmul.mubr.msk.f32.vlgmr.msra.gmra.mrb[0].mxu1 %vm103_vm0, %v102_v22  ;;  %v276_v34 = vsel %vm103_vm0, %v275_v18, 0.0  ;;  %v692_v39 = vmul.f32 %v2433_v27, %v2433_v27  ;;  %v778_v40 = vsel %vm103_vm0, %v777_v35, 0.0  ;;  %v2569_v46 = vpack.c.bf16 %v1779_v44, %v1778_v43 }
  0x5a   :  { %2051 = vmatpush3.bf16.msra.mxu1 %v2422_v24  ;;  %1965 = vmatprep.mubr.msk.f32.mxu1 %vm2160_vm2, %v2161_v5  ;;  %1759 = vst.msk [vmem:[%s2758_s7 + $0x30] sm:$0xff] %vm103_vm0, %v228_v32  ;;  %v248_v36 = vadd.f32 %v247_v9, %v245_v33  ;;  %v862_v42 = vmul.f32 %v228_v32, %v228_v32  ;;  %v1635_v33 = vstv %s1838_s25  ;;  %v1568_v43 = vstv %s2619_s4  ;;  %s2685_s25 = sld [smem:[#allocation6 + $0x186]] }
  0x5b   :  { %277 = vadd.xlane.f32.xlu0 %v276_v34  ;;  %609 = vadd.xlane.f32.xlu1 %v608_v29  ;;  %v693_v27 = vsel %vm103_vm0, %v692_v39, 0.0  ;;  %v1671_v34 = vstv %s1848_s3  ;;  %v1603_v44 = vstv %s2621_s0  ;;  %s2691_s0 = sld [smem:[#allocation6 + $0x7]] }
  0x5c   :  { %2052 = vmatprep.subr.bf16.mxu1 %v2159_v2  ;;  %v249_v24 = vmax.f32 %v248_v36, 0.0  ;;  %v863_v47 = vsel %vm103_vm0, %v862_v42, 0.0 }
  0x5e   :  { %1765 = vst.msk [vmem:[%s2758_s7 + $0x38] sm:$0xff] %vm103_vm0, %v249_v24  ;;  %v947_v41 = vmul.f32 %v249_v24, %v249_v24  ;;  %s2659_s7 = sld [smem:[#allocation6 + $0x5]] }
  0x5f   :  { %1945 = vmatmul.mubr.msk.f32.vlgmr.msra.gmra.mrb[0].mxu0 %vm103_vm0, %v207_v11  ;;  %439 = vadd.xlane.f32.xlu0 %v438_v38 }
  0x60   :  { %2044 = vmatpush3.bf16.xpose.msk.msra.mxu0 %vm2233_vm1, %v2543_v37  ;;  %1951 = vmatprep.mubr.msk.f32.mxu0 %vm2160_vm2, %v2161_v5  ;;  %v948_v45 = vsel %vm103_vm0, %v947_v41, 0.0 }
  0x61   :  { %2045 = vmatprep.subr.bf16.mxu0 %v2159_v2  ;;  %779 = vadd.xlane.f32.xlu1 %v778_v40 }
  0x63   :  { %694 = vadd.xlane.f32.xlu0 %v693_v27 }
  0x65   :  { %949 = vadd.xlane.f32.xlu1 %v948_v45  ;;  %v1639_v45 = vstv %s2623_s26  ;;  %s2693_s26 = sld [smem:[#allocation6 + $0x87]] }
  0x67   :  { %1952 = vmatmul.mubr.msk.f32.vlgmr.msra.gmra.mrb[0].mxu0 %vm103_vm0, %v228_v32  ;;  %864 = vadd.xlane.f32.xlu0 %v863_v47  ;;  %v1599_v32 = vstv %s1828_s23  ;;  %s2683_s23 = sld [smem:[#allocation6 + $0x106]] }
  0x68   :  { %2048 = vmatpush3.bf16.xpose.msk.msra.mxu0 %vm2233_vm1, %v2569_v46  ;;  %1958 = vmatprep.mubr.msk.f32.mxu0 %vm2160_vm2, %v2161_v5 }
  0x6f   :  { %1959 = vmatmul.mubr.msk.f32.vlgmr.msra.gmra.mrb[0].mxu0 %vm103_vm0, %v249_v24 }
  0xe4   :  { %v525_v50 = vpop.xlane.xlu1 %524 }
  0xe8   :  { %v278_v48 = vpop.xlane.xlu0 %277  ;;  %v610_v54 = vpop.xlane.xlu1 %609 }
  0xec   :  { %v440_v49 = vpop.xlane.xlu0 %439 }
  0xed   :  { %v441_v51 = vadd.f32 %v440_v49, %v278_v48 }
  0xee   :  { %v780_v58 = vpop.xlane.xlu1 %779 }
  0xef   :  { %v526_v52 = vadd.f32 %v525_v50, %v441_v51 }
  0xf0   :  { %v695_v56 = vpop.xlane.xlu0 %694 }
  0xf1   :  { %v611_v55 = vadd.f32 %v610_v54, %v526_v52 }
  0xf2   :  { %v950_v3 = vpop.xlane.xlu1 %949 }
  0xf3   :  { %v696_v57 = vadd.f32 %v695_v56, %v611_v55 }
  0xf4   :  { %v865_v62 = vpop.xlane.xlu0 %864 }
  0xf5   :  { %v781_v61 = vadd.f32 %v780_v58, %v696_v57  ;;  %v1572_v58 = vstv %s2631_s13 }
  0xf7   :  { %v866_v63 = vadd.f32 %v865_v62, %v781_v61  ;;  %v1607_v61 = vstv %s2633_s14  ;;  %v1643_v62 = vstv %s2635_s15  ;;  %s2707_s14 = sld [smem:[#allocation7]]  ;;  %s2709_s15 = sld [smem:[#allocation7 + $0x1]] }
  0xf9   :  { %v951_v0 = vadd.f32 %v950_v3, %v866_v63  ;;  %v1679_v63 = vstv %s2637_s2  ;;  %s2715_s2 = sld [smem:[#allocation7 + $0x2]] }
  0xfb   :  { %2093 = vrsqrt.f32 %v951_v0  ;;  %vm954_vm3 = vcmp.eq.f32.partialorder %v951_v0, inf  ;;  %v957_v11 = vand.u32 2147483648, %v951_v0  ;;  %vm956_vm4 = vcmp.eq.f32.partialorder %v951_v0, 0.0 }
 0x105   :  { %v2094_v1 = vpop.eup %2093 }
 0x106   :  { %v953_v10 = vmul.f32 %v2094_v1, %v951_v0 }
 0x108   :  { %v955_v13 = vsel %vm954_vm3, %v951_v0, %v953_v10 }
 0x109   :  { %v958_v16 = vsel %vm956_vm4, %v957_v11, %v955_v13 }
 0x10a   :  { %v966_v19 = vmul.f32 %v1804_v17, %v958_v16 }
 0x10c   :  { %v967_v20 = vmax.f32 %v966_v19, 1e-08  ;;  %v1576_v19 = vstv %s2643_s10 }
 0x10e   :  { %2095 = vrcp.f32 %v967_v20  ;;  %v1611_v20 = vstv %s2645_s11 }
 0x118   :  { %v2096_v22 = vpop.eup %2095 }
 0x12c   :  { %v433_v12 = vpop.f32.mrb[0].mxu1 }
 0x12d   :  { %v1918_v15 = vpop.f32.mrb[1].mxu1 }
 0x142   :  { %v942_v6 = vpop.f32.mrb[0].mxu0 }
 0x143   :  { %v2073_v21 = vadd.f32 %v942_v6, %v433_v12  ;;  %v1960_v7 = vpop.f32.mrb[1].mxu0  ;;  %v1647_v6 = vstv %s2651_s17 }
 0x145   :  { %v969_v8 = vmul.f32 %v2096_v22, %v2073_v21  ;;  %v1683_v21 = vstv %s2653_s1 }
 0x147   :  { %v971_v25 = vsel %vm970_vm5, %v969_v8, -inf }
 0x148   :  { %972 = vmax.xlane.f32.xlu0 %v971_v25 }
 0x1d5   :  { %v973_v26 = vpop.xlane.xlu0 %972 }
 0x1d6   :  { %v974_v59 = vsub.f32 %v969_v8, %v973_v26 }
 0x1d8   :  { %v975_v9 = vmul.f32 1.442695, %v974_v59 }
 0x1da   :  { %2097 = vpow2.f32 %v975_v9 }
 0x1e4   :  { %v2098_v18 = vpop.eup %2097 }
 0x1e5   :  { %v977_v28 = vsel %vm970_vm5, %v2098_v18, 0.0 }
 0x1e6   :  { %978 = vadd.xlane.f32.xlu1 %v977_v28 }
 0x273   :  { %v979_v29 = vpop.xlane.xlu1 %978 }
 0x274   :  { %2099 = vrcp.f32 %v979_v29 }
 0x27e   :  { %v2100_v30 = vpop.eup %2099 }
 0x27f   :  { %v981_v31 = vmul.f32 %v2100_v30, %v2098_v18  ;;  %v1580_v30 = vstv %s2659_s7 }
 0x281   :  { %1966 = vmatmul.mubr.msk.f32.vlgmr.msra.gmra.mrb[2].mxu1 %vm970_vm5, %v981_v31 }
 0x282   :  { %2054 = vmatpush3.bf16.msra.mxu1 %v2296_v14  ;;  %1972 = vmatprep.mubr.msk.f32.mxu1 %vm2160_vm2, %v2161_v5  ;;  %v1632_v14 = vstv %s1837_s21 }
 0x283   :  { %2055 = vmatprep.subr.bf16.mxu1 %v2159_v2 }
 0x285   :  { %1973 = vmatmul.mubr.msk.f32.vlgmr.msra.gmra.mrb[4].mxu1 %vm970_vm5, %v981_v31 }
 0x286   :  { %2057 = vmatpush3.bf16.msra.mxu1 %v2237_v4  ;;  %1979 = vmatprep.mubr.msk.f32.mxu1 %vm2160_vm2, %v2161_v5  ;;  %v1561_v4 = vstv %s1560_s6  ;;  %s2669_s6 = sld [smem:[#allocation6 + $0x185]] }
 0x287   :  { %2058 = vmatprep.subr.bf16.mxu1 %v2159_v2 }
 0x289   :  { %1980 = vmatmul.mubr.msk.f32.vlgmr.msra.gmra.mrb[6].mxu1 %vm970_vm5, %v981_v31 }
 0x28a   :  { %2060 = vmatpush3.bf16.msra.mxu1 %v2317_v23  ;;  %1986 = vmatprep.mubr.msk.f32.mxu1 %vm2160_vm2, %v2161_v5  ;;  %v1668_v23 = vstv %s1847_s22  ;;  %s2675_s22 = sld [smem:[#allocation6 + $0x6]] }
 0x28b   :  { %2061 = vmatprep.subr.bf16.mxu1 %v2159_v2 }
 0x28d   :  { %1987 = vmatmul.mubr.msk.f32.vlgmr.msra.gmra.mrb[8].mxu1 %vm970_vm5, %v981_v31 }
 0x28e   :  { %2063 = vmatpush3.bf16.msra.mxu1 %v2378_v60  ;;  %1993 = vmatprep.mubr.msk.f32.mxu1 %vm2160_vm2, %v2161_v5 }
 0x28f   :  { %2064 = vmatprep.subr.bf16.mxu1 %v2159_v2 }
 0x291   :  { %1994 = vmatmul.mubr.msk.f32.vlgmr.msra.gmra.mrb[10].mxu1 %vm970_vm5, %v981_v31 }
 0x292   :  { %2066 = vmatpush3.bf16.msra.mxu1 %v2477_v53  ;;  %2000 = vmatprep.mubr.msk.f32.mxu1 %vm2160_vm2, %v2161_v5  ;;  %v1564_v53 = vstv %s1820_s24  ;;  %s2677_s24 = sld [smem:[#allocation6 + $0x86]] }
 0x293   :  { %2067 = vmatprep.subr.bf16.mxu1 %v2159_v2 }
 0x295   :  { %2001 = vmatmul.mubr.msk.f32.vlgmr.msra.gmra.mrb[12].mxu1 %vm970_vm5, %v981_v31 }
 0x296   :  { %2069 = vmatpush3.bf16.msra.mxu1 %v2543_v37  ;;  %2007 = vmatprep.mubr.msk.f32.mxu1 %vm2160_vm2, %v2161_v5 }
 0x297   :  { %2070 = vmatprep.subr.bf16.mxu1 %v2159_v2 }
 0x299   :  { %2008 = vmatmul.mubr.msk.f32.vlgmr.msra.gmra.mrb[14].mxu1 %vm970_vm5, %v981_v31 }
 0x29a   :  { %2072 = vmatpush3.bf16.msra.mxu1 %v2569_v46  ;;  %2014 = vmatprep.mubr.msk.f32.mxu1 %vm2160_vm2, %v2161_v5  ;;  %v1596_v5 = vstv %s1827_s20  ;;  %v1675_v46 = vstv %s2625_s27  ;;  %s2699_s27 = sld [smem:[#allocation6 + $0x107]] }
 0x29d   :  { %2015 = vmatmul.mubr.msk.f32.vlgmr.msra.gmra.mrb[16].mxu1 %vm970_vm5, %v981_v31  ;;  %v1615_v31 = vstv %s2661_s5 }
 0x354   :  { %v1051_v2 = vpop.f32.mrb[2].mxu1 }
 0x355   :  { %1055 = vst.msk [vmem:[%s2759_s8] sm:$0xff] %vm103_vm0, %v1051_v2  ;;  %v1967_v60 = vpop.f32.mrb[3].mxu1  ;;  %v1562_v35 = vmul.f32 %v1561_v4, %v1051_v2  ;;  %v1597_v36 = vmul.f32 %v1596_v5, %v1051_v2  ;;  %v1633_v37 = vmul.f32 %v1632_v14, %v1051_v2  ;;  %v1669_v38 = vmul.f32 %v1668_v23, %v1051_v2 }
 0x356   :  { %v1651_v2 = vstv %s2667_s19  ;;  %v1687_v4 = vstv %s2669_s6 }
 0x358   :  { %v1122_v39 = vpop.f32.mrb[4].mxu1 }
 0x359   :  { %1807 = vst.msk [vmem:[%s2759_s8 + $0x8] sm:$0xff] %vm103_vm0, %v1122_v39  ;;  %v1565_v24 = vmul.f32 %v1564_v53, %v1122_v39  ;;  %v1600_v40 = vmul.f32 %v1599_v32, %v1122_v39  ;;  %v1636_v41 = vmul.f32 %v1635_v33, %v1122_v39  ;;  %v1672_v27 = vmul.f32 %v1671_v34, %v1122_v39  ;;  %v1974_v42 = vpop.f32.mrb[5].mxu1 }
 0x35a   :  { %v1655_v39 = vstv %s2683_s23 }
 0x35b   :  { %v1566_v47 = vadd.f32 %v1565_v24, %v1562_v35  ;;  %v1601_v48 = vadd.f32 %v1600_v40, %v1597_v36  ;;  %v1637_v49 = vadd.f32 %v1636_v41, %v1633_v37  ;;  %v1673_v50 = vadd.f32 %v1672_v27, %v1669_v38 }
 0x35c   :  { %v1194_v51 = vpop.f32.mrb[6].mxu1  ;;  %v1584_v37 = vstv %s2675_s22  ;;  %v1619_v38 = vstv %s2677_s24  ;;  %v1691_v24 = vstv %s2685_s25 }
 0x35d   :  { %1809 = vst.msk [vmem:[%s2759_s8 + $0x10] sm:$0xff] %vm103_vm0, %v1194_v51  ;;  %v1569_v52 = vmul.f32 %v1568_v43, %v1194_v51  ;;  %v1604_v54 = vmul.f32 %v1603_v44, %v1194_v51  ;;  %v1640_v55 = vmul.f32 %v1639_v45, %v1194_v51  ;;  %v1676_v56 = vmul.f32 %v1675_v46, %v1194_v51  ;;  %v1981_v57 = vpop.f32.mrb[7].mxu1 }
 0x35e   :  { %v1659_v51 = vstv %s2699_s27 }
 0x35f   :  { %v1570_v3 = vadd.f32 %v1569_v52, %v1566_v47  ;;  %v1605_v0 = vadd.f32 %v1604_v54, %v1601_v48  ;;  %v1641_v1 = vadd.f32 %v1640_v55, %v1637_v49  ;;  %v1677_v10 = vadd.f32 %v1676_v56, %v1673_v50 }
 0x360   :  { %v1266_v11 = vpop.f32.mrb[8].mxu1  ;;  %v1588_v49 = vstv %s2691_s0  ;;  %v1623_v50 = vstv %s2693_s26  ;;  %v1695_v52 = vstv %s2701_s28 }
 0x361   :  { %1811 = vst.msk [vmem:[%s2759_s8 + $0x18] sm:$0xff] %vm103_vm0, %v1266_v11  ;;  %v1573_v12 = vmul.f32 %v1572_v58, %v1266_v11  ;;  %v1608_v13 = vmul.f32 %v1607_v61, %v1266_v11  ;;  %v1644_v15 = vmul.f32 %v1643_v62, %v1266_v11  ;;  %v1680_v16 = vmul.f32 %v1679_v63, %v1266_v11  ;;  %v1988_v17 = vpop.f32.mrb[9].mxu1 }
 0x362   :  { %v1663_v11 = vstv %s2715_s2 }
 0x363   :  { %v1574_v7 = vadd.f32 %v1573_v12, %v1570_v3  ;;  %v1609_v22 = vadd.f32 %v1608_v13, %v1605_v0  ;;  %v1645_v8 = vadd.f32 %v1644_v15, %v1641_v1  ;;  %v1681_v25 = vadd.f32 %v1680_v16, %v1677_v10 }
 0x364   :  { %v1338_v26 = vpop.f32.mrb[10].mxu1  ;;  %v1592_v1 = vstv %s2707_s14  ;;  %v1627_v10 = vstv %s2709_s15  ;;  %v1699_v12 = vstv %s2717_s29 }
 0x365   :  { %1813 = vst.msk [vmem:[%s2759_s8 + $0x20] sm:$0xff] %vm103_vm0, %v1338_v26  ;;  %v1577_v59 = vmul.f32 %v1576_v19, %v1338_v26  ;;  %v1612_v9 = vmul.f32 %v1611_v20, %v1338_v26  ;;  %v1648_v18 = vmul.f32 %v1647_v6, %v1338_v26  ;;  %v1684_v28 = vmul.f32 %v1683_v21, %v1338_v26  ;;  %v1995_v29 = vpop.f32.mrb[11].mxu1 }
 0x367   :  { %v1578_v5 = vadd.f32 %v1577_v59, %v1574_v7  ;;  %v1613_v14 = vadd.f32 %v1612_v9, %v1609_v22  ;;  %v1649_v23 = vadd.f32 %v1648_v18, %v1645_v8  ;;  %v1685_v60 = vadd.f32 %v1684_v28, %v1681_v25 }
 0x368   :  { %v1410_v53 = vpop.f32.mrb[12].mxu1 }
 0x369   :  { %1815 = vst.msk [vmem:[%s2759_s8 + $0x28] sm:$0xff] %vm103_vm0, %v1410_v53  ;;  %v1581_v32 = vmul.f32 %v1580_v30, %v1410_v53  ;;  %v1616_v33 = vmul.f32 %v1615_v31, %v1410_v53  ;;  %v1652_v34 = vmul.f32 %v1651_v2, %v1410_v53  ;;  %v1688_v35 = vmul.f32 %v1687_v4, %v1410_v53  ;;  %v2002_v36 = vpop.f32.mrb[13].mxu1 }
 0x36b   :  { %v1582_v40 = vadd.f32 %v1581_v32, %v1578_v5  ;;  %v1617_v41 = vadd.f32 %v1616_v33, %v1613_v14  ;;  %v1653_v27 = vadd.f32 %v1652_v34, %v1649_v23  ;;  %v1689_v42 = vadd.f32 %v1688_v35, %v1685_v60 }
 0x36c   :  { %v1482_v43 = vpop.f32.mrb[14].mxu1 }
 0x36d   :  { %1817 = vst.msk [vmem:[%s2759_s8 + $0x30] sm:$0xff] %vm103_vm0, %v1482_v43  ;;  %v1585_v44 = vmul.f32 %v1584_v37, %v1482_v43  ;;  %v1620_v45 = vmul.f32 %v1619_v38, %v1482_v43  ;;  %v1656_v46 = vmul.f32 %v1655_v39, %v1482_v43  ;;  %v1692_v47 = vmul.f32 %v1691_v24, %v1482_v43  ;;  %v2009_v48 = vpop.f32.mrb[15].mxu1 }
 0x36f   :  { %v1586_v54 = vadd.f32 %v1585_v44, %v1582_v40  ;;  %v1621_v55 = vadd.f32 %v1620_v45, %v1617_v41  ;;  %v1657_v56 = vadd.f32 %v1656_v46, %v1653_v27  ;;  %v1693_v57 = vadd.f32 %v1692_v47, %v1689_v42 }
 0x370   :  { %v1554_v58 = vpop.f32.mrb[16].mxu1 }
 0x371   :  { %1819 = vst.msk [vmem:[%s2759_s8 + $0x38] sm:$0xff] %vm103_vm0, %v1554_v58  ;;  %v1589_v61 = vmul.f32 %v1588_v49, %v1554_v58  ;;  %v1624_v62 = vmul.f32 %v1623_v50, %v1554_v58  ;;  %v1660_v63 = vmul.f32 %v1659_v51, %v1554_v58  ;;  %v1696_v3 = vmul.f32 %v1695_v52, %v1554_v58  ;;  %v2016_v0 = vpop.f32.mrb[17].mxu1 }
 0x373   :  { %v1590_v13 = vadd.f32 %v1589_v61, %v1586_v54  ;;  %v1625_v15 = vadd.f32 %v1624_v62, %v1621_v55  ;;  %v1661_v16 = vadd.f32 %v1660_v63, %v1657_v56  ;;  %v1697_v17 = vadd.f32 %v1696_v3, %v1693_v57 }
 0x375   :  { %v1593_v19 = vadd.f32 %v1592_v1, %v1590_v13  ;;  %v1628_v20 = vadd.f32 %v1627_v10, %v1625_v15  ;;  %v1664_v6 = vadd.f32 %v1663_v11, %v1661_v16  ;;  %v1700_v21 = vadd.f32 %v1699_v12, %v1697_v17 }
 0x377   :  { %1594 = vst.msk [vmem:[%s2760_s9] sm:$0xff] %vm103_vm0, %v1593_v19  ;;  %1836 = vst.msk [vmem:[%s2760_s9 + $0x8] sm:$0xff] %vm103_vm0, %v1628_v20 }
 0x378   :  { %1846 = vst.msk [vmem:[%s2760_s9 + $0x10] sm:$0xff] %vm103_vm0, %v1664_v6  ;;  %1856 = vst.msk [vmem:[%s2760_s9 + $0x18] sm:$0xff] %vm103_vm0, %v1700_v21 }
 0x379   :  { %1715 = vsyncpa [#allocation3], 1 }
 0x37a   :  { %1716 = vsyncpa [#allocation5], 1 }
 0x37b   :  { %1717 = vsyncpa [#allocation8], 1 }

</bundles_post_ra>
